<compile_context>
chip_gen: v7x
topology: tpu7x:2x2x1
jax: 0.10.0
libtpu: 0.0.40
codegen_flags: <defaults>
</compile_context>

<pallas_src>
import math
from functools import partial

import numpy as np
import jax
import jax.numpy as jnp
from jax.experimental import pallas as pl
from jax.experimental.pallas import tpu as pltpu

LRELU_SCALE = math.sqrt(2.0)  # fused_leaky_relu default scale (2 ** 0.5)


def _round_up(v, m):
    return (v + m - 1) // m * m


# ----------------------------------------------------------------------------
# Host-side glue: exact linear operator of upfirdn1d along one axis.
# Semantics match stylegan2 upfirdn2d_native: zero-stuff by `up`, pad by
# (pad0, pad1), cross-correlate with the flipped kernel (= true convolution
# with the kernel), then keep every `down`-th sample.
# ----------------------------------------------------------------------------
def upfirdn1d_matrix(length, kernel, up, down, pad0, pad1):
    kernel = np.asarray(kernel, dtype=np.float64)
    K = kernel.shape[0]
    kflip = kernel[::-1]
    out_len = (length * up + pad0 + pad1 - K) // down + 1
    M = np.zeros((out_len, length), dtype=np.float64)
    for i in range(out_len):
        for t in range(K):
            pos = i * down + t - pad0  # index into the zero-stuffed signal
            if pos >= 0 and pos % up == 0:
                j = pos // up
                if 0 <= j < length:
                    M[i, j] += kflip[t]
    return M


def build_alias_free_params(H, W, upsample_filter, downsample_filter,
                            up, down, margin, padding):
    """Replicates AliasFreeActivation.__init__ (1-D separable filter path)."""
    upsample_filter = np.asarray(upsample_filter, dtype=np.float64)
    downsample_filter = np.asarray(downsample_filter, dtype=np.float64)
    # Guard: only the separable 1-D filter branch is implemented.
    assert upsample_filter.ndim == 1 and downsample_filter.ndim == 1, (
        "only 1-D (separable) filters are supported")

    up_filt = upsample_filter * up           # 1-D filter: gain *= up
    dn_filt = downsample_filter

    p = up_filt.shape[0] - up
    if padding:
        up_pad = ((p + 1) // 2 + up - 1, p // 2)
    else:
        up_pad = ((p + 1) // 2 + up * 2 - 1, p // 2 + up)
    p = dn_filt.shape[0] - down
    down_pad = ((p + 1) // 2, p // 2)

    Mup_h = upfirdn1d_matrix(H, up_filt, up, 1, up_pad[0], up_pad[1])
    Mup_w = upfirdn1d_matrix(W, up_filt, up, 1, up_pad[0], up_pad[1])
    H1, W1 = Mup_h.shape[0], Mup_w.shape[0]
    Mdn_h = upfirdn1d_matrix(H1, dn_filt, 1, down, down_pad[0], down_pad[1])
    Mdn_w = upfirdn1d_matrix(W1, dn_filt, 1, down, down_pad[0], down_pad[1])
    H2, W2 = Mdn_h.shape[0], Mdn_w.shape[0]

    m = max((margin * up - margin * down) // 2, 0)
    Ho, Wo = H2 - 2 * m, W2 - 2 * m
    return dict(Mup_h=Mup_h, Mup_w=Mup_w, Mdn_h=Mdn_h, Mdn_w=Mdn_w,
                m=m, Ho=Ho, Wo=Wo)


# ----------------------------------------------------------------------------
# Generation-aware VMEM limit + TensorCore count.
# ----------------------------------------------------------------------------
def _tpu_vmem_and_cores():
    cap = 64 * 1024 * 1024    # conservative fallback (v7x physical per-TC)
    cores = 1
    try:
        info = pltpu.get_tpu_info()
        cap = int(getattr(info, "vmem_capacity_bytes", cap) or cap)
        for name in ("tensorcore_count", "num_tensorcores", "num_cores",
                     "core_count"):
            v = getattr(info, name, None)
            if v:
                cores = int(v)
                break
    except Exception:
        pass
    # 75% of physical: 48 MiB on a 64 MiB chip (v7x), 96 MiB on 128 MiB chips.
    limit = min(int(cap * 3 // 4), 112 * 1024 * 1024)
    return limit, cores


def _choose_c_blk(C, N, Hp, W, W1P, H1P, HoP, WoP, in_bytes, out_bytes,
                  cd_bytes, vmem_limit_bytes, num_cores):
    """Largest valid channel-block whose per-step working set (including the
    double-buffered constant matrices) stays inside the VMEM limit."""
    const_bytes = 2 * cd_bytes * (W * W1P + Hp * H1P + H1P * HoP + W1P * WoP)
    budget = max(vmem_limit_bytes - const_bytes - (2 << 20), 1 << 20)
    # conservative per-channel live set: f32 intermediates (both sides of each
    # transpose counted) + double-buffered input/bias/output pipeline blocks.
    per_ch = 4 * (Hp * W + 2 * Hp * W1P + 2 * W1P * H1P
                  + 2 * W1P * HoP + HoP * W1P + HoP * WoP)
    per_ch += 2 * in_bytes * (Hp * W + 128) + 2 * out_bytes * HoP * WoP
    # bias block is (c_blk, 128): c_blk must be C (full dim) or a multiple of 8
    cands = [d for d in range(1, C + 1)
             if C % d == 0 and (d == C or d % 8 == 0)]
    best = None
    for d in cands:
        if d * per_ch > budget:
            continue
        if num_cores > 1 and N == 1 and d == C and C > 1:
            continue  # keep >= 2 grid steps only where megacore can shard them
        best = d
    if best is None:
        best = cands[0]
    return best


# ----------------------------------------------------------------------------
# Pallas kernel: one (n, channel-block) slab per grid step.
# All data is kept in fused 2-D form (channels folded into the sublane axis);
# the two per-channel H<->W axis swaps are XLU transposes that overlap the
# MXU matmuls (the second one is a clean 128x128 tile transpose).
# ----------------------------------------------------------------------------
def _aliasfree_kernel(bias_ref, x_ref, mupw_ref, muph_ref, mdnh_ref, mdnw_ref,
                      o_ref, *, neg_slope, c_blk, hp, compute_dtype):
    w1p = mupw_ref.shape[1]          # padded W1 (multiple of 128)
    hop = mdnh_ref.shape[1]          # padded Ho (multiple of 128)
    W = x_ref.shape[2]
    cd = compute_dtype
    f32 = jnp.float32

    # lane-dense bias row -> per-channel scalar, broadcast over (Hp, W)
    b = bias_ref[...][:, :1].reshape(c_blk, 1, 1)                   # (c,1,1)
    x3 = x_ref[0].reshape(c_blk, hp, W)
    xb = (x3 + b).astype(cd).reshape(c_blk * hp, W)                 # (c*hp, W)

    # width upsample FIR (zero-stuff folded into the matrix)
    t = jnp.dot(xb, mupw_ref[...], preferred_element_type=f32)      # (c*hp, W1P)
    # per-channel transpose so height becomes the contraction axis
    t = t.reshape(c_blk, hp, w1p)
    t = jnp.swapaxes(t, 1, 2).reshape(c_blk * w1p, hp)              # (c*W1P, hp)
    # height upsample FIR (zero rows of the matrix kill the padded-H bias rows)
    u = jnp.dot(t.astype(cd), muph_ref[...],
                preferred_element_type=f32)                         # (c*W1P, H1P)
    # fused_leaky_relu (bias=None); the sqrt(2) gain is folded into mdnh
    a = jnp.where(u >= 0, u, u * neg_slope)
    # height downsample FIR + stride + margin crop (folded into the matrix)
    d = jnp.dot(a.astype(cd), mdnh_ref[...],
                preferred_element_type=f32)                         # (c*W1P, HoP)
    d = d.reshape(c_blk, w1p, hop)
    d = jnp.swapaxes(d, 1, 2).reshape(c_blk * hop, w1p)             # (c*HoP, W1P)
    # width downsample FIR + stride + margin crop (folded into the matrix)
    o = jnp.dot(d.astype(cd), mdnw_ref[...],
                preferred_element_type=f32)                         # (c*HoP, WoP)
    o_ref[0] = o.astype(o_ref.dtype)                                # dense store


def alias_free_activation(x, bias, params, negative_slope, *,
                          compute_dtype=jnp.bfloat16, c_blk=None):
    N, C, H, W = x.shape
    Mup_h, Mup_w = params["Mup_h"], params["Mup_w"]
    Mdn_h, Mdn_w = params["Mdn_h"], params["Mdn_w"]
    m, Ho, Wo = params["m"], params["Ho"], params["Wo"]
    H1, W1 = Mup_h.shape[0], Mup_w.shape[0]

    # Sublane-aligned input height; lane-dense (128-multiple) matmul N-dims.
    # Padding is done with zero rows/cols of the constant matrices so the
    # padded lanes stay exactly zero and are cropped in the wrapper.
    Hp = _round_up(H, 8)
    W1P = _round_up(W1, 128)
    H1P = _round_up(H1, 128)
    HoP = _round_up(Ho, 128)
    WoP = _round_up(Wo, 128)

    # ---- fold margin crop + sqrt(2) gain into the constant matrices --------
    mupw_t = np.zeros((W, W1P), np.float64)
    mupw_t[:, :W1] = Mup_w.T
    muph_t = np.zeros((Hp, H1P), np.float64)
    muph_t[:H, :H1] = Mup_h.T
    mdnh_t = np.zeros((H1P, HoP), np.float64)
    mdnh_t[:H1, :Ho] = (LRELU_SCALE * Mdn_h[m:m + Ho, :]).T
    mdnw_t = np.zeros((W1P, WoP), np.float64)
    mdnw_t[:W1, :Wo] = Mdn_w[m:m + Wo, :].T

    cd = compute_dtype
    mupw_t = jnp.asarray(mupw_t, cd)
    muph_t = jnp.asarray(muph_t, cd)
    mdnh_t = jnp.asarray(mdnh_t, cd)
    mdnw_t = jnp.asarray(mdnw_t, cd)

    # ---- present x / bias as fused 2-D slabs (free NCHW reshapes) ----------
    if Hp != H:
        x = jnp.pad(x, ((0, 0), (0, 0), (0, Hp - H), (0, 0)))
    x2 = x.reshape(N, C * Hp, W)
    # lane-dense per-channel bias rows (replicated across 128 lanes)
    bias_rows = jnp.tile(jnp.asarray(bias, x.dtype).reshape(C, 1), (1, 128))

    vmem_limit, num_cores = _tpu_vmem_and_cores()
    itemsize = jnp.dtype(x.dtype).itemsize
    if c_blk is None:
        c_blk = _choose_c_blk(C, N, Hp, W, W1P, H1P, HoP, WoP,
                              itemsize, itemsize, jnp.dtype(cd).itemsize,
                              vmem_limit, num_cores)
    assert C % c_blk == 0 and (c_blk == C or c_blk % 8 == 0)
    grid = (N, C // c_blk)

    kernel = partial(_aliasfree_kernel, neg_slope=float(negative_slope),
                     c_blk=int(c_blk), hp=int(Hp), compute_dtype=cd)

    out = pl.pallas_call(
        kernel,
        out_shape=jax.ShapeDtypeStruct((N, C * HoP, WoP), x.dtype),
        grid=grid,
        in_specs=[
            pl.BlockSpec((c_blk, 128), lambda n, c: (c, 0)),           # bias rows
            pl.BlockSpec((1, c_blk * Hp, W), lambda n, c: (n, c, 0)),  # x slab
            pl.BlockSpec((W, W1P), lambda n, c: (0, 0)),               # Mup_w^T
            pl.BlockSpec((Hp, H1P), lambda n, c: (0, 0)),              # Mup_h^T
            pl.BlockSpec((H1P, HoP), lambda n, c: (0, 0)),             # Mdn_h^T (crop+sqrt2)
            pl.BlockSpec((W1P, WoP), lambda n, c: (0, 0)),             # Mdn_w^T (crop)
        ],
        out_specs=pl.BlockSpec((1, c_blk * HoP, WoP), lambda n, c: (n, c, 0)),
        compiler_params=pltpu.CompilerParams(
            dimension_semantics=("parallel", "parallel"),
            vmem_limit_bytes=int(vmem_limit)),
    )(bias_rows, x2, mupw_t, muph_t, mdnh_t, mdnw_t)

    out = out.reshape(N, C, HoP, WoP)[:, :, :Ho, :Wo]
    return out


# ----------------------------------------------------------------------------
# Pure-numpy reference (float64) for a correctness sanity check.
# ----------------------------------------------------------------------------
def ref_forward_np(x, bias, params, neg_slope):
    x = np.asarray(x, np.float64)
    b = np.asarray(bias, np.float64).reshape(1, -1, 1, 1)
    Mup_h, Mup_w = params["Mup_h"], params["Mup_w"]
    Mdn_h, Mdn_w = params["Mdn_h"], params["Mdn_w"]
    m, Ho, Wo = params["m"], params["Ho"], params["Wo"]

    t = x + b
    u = np.einsum("ij,ncjk->ncik", Mup_h, t)
    u = np.einsum("ncik,lk->ncil", u, Mup_w)
    a = np.where(u >= 0, u, u * neg_slope) * math.sqrt(2.0)
    d = np.einsum("ij,ncjk->ncik", Mdn_h, a)
    d = np.einsum("ncik,lk->ncil", d, Mdn_w)
    return d[:, :, m:m + Ho, m:m + Wo]


if __name__ == "__main__":
    # Module configuration (1-D separable filters, as used by alias-free GAN).
    N, C, H, W = 2, 4, 16, 16
    upsample, downsample = 2, 1
    margin = 4
    negative_slope = 0.2
    padding = True
    up_filter = np.array([1.0, 3.0, 6.0, 6.0, 3.0, 1.0])
    up_filter = up_filter / up_filter.sum()
    dn_filter = np.array([1.0, 3.0, 3.0, 1.0])
    dn_filter = dn_filter / dn_filter.sum()

    params = build_alias_free_params(H, W, up_filter, dn_filter,
                                     upsample, downsample, margin, padding)

    # Deterministic inputs / parameters.
    key = jax.random.PRNGKey(0)
    kx, kb = jax.random.split(key)
    x = jax.random.normal(kx, (N, C, H, W), dtype=jnp.float32)
    bias = 0.1 * jax.random.normal(kb, (C,), dtype=jnp.float32)

    ref = ref_forward_np(np.asarray(x), np.asarray(bias), params, negative_slope)

    # f32 operand path — tight check.
    out = alias_free_activation(x, bias, params, negative_slope,
                                compute_dtype=jnp.float32)
    out = jax.block_until_ready(out)
    assert out.shape == ref.shape, (out.shape, ref.shape)
    err = float(np.max(np.abs(np.asarray(out, np.float64) - ref)))
    assert err < 1e-2, f"f32 max abs error too large: {err}"

    # bf16 operands / f32 accumulation (MXU-native default path) — loose check.
    out_bf = alias_free_activation(x, bias, params, negative_slope,
                                   compute_dtype=jnp.bfloat16)
    out_bf = jax.block_until_ready(out_bf)
    assert out_bf.shape == ref.shape, (out_bf.shape, ref.shape)
    err_bf = float(np.max(np.abs(np.asarray(out_bf, np.float64) - ref)))
    assert err_bf < 1.5e-1, f"bf16 max abs error too large: {err_bf}"

    print("KERNEL_OK")
</pallas_src>

<mosaic_0001>
module attributes {stable_mosaic.version = 11 : i64} {
  func.func @_aliasfree_kernel(%arg0: i32, %arg1: i32, %arg2: memref<4x128xf32, #tpu.memory_space<vmem>>, %arg3: memref<1x64x16xf32, #tpu.memory_space<vmem>>, %arg4: memref<16x128xf32, #tpu.memory_space<vmem>>, %arg5: memref<16x128xf32, #tpu.memory_space<vmem>>, %arg6: memref<128x128xf32, #tpu.memory_space<vmem>>, %arg7: memref<128x128xf32, #tpu.memory_space<vmem>>, %arg8: memref<1x512x128xf32, #tpu.memory_space<vmem>>) attributes {dimension_semantics = [#tpu.dimension_semantics<parallel>, #tpu.dimension_semantics<parallel>], iteration_bounds = array<i64: 2, 1>, scalar_prefetch = 0 : i64, scratch_operands = 0 : i64, tpu.core_type = #tpu.core_type<tc>, window_params = [{transform_indices = @transform_0, window_bounds = array<i64: 4, 128>}, {transform_indices = @transform_1, window_bounds = array<i64: 1, 64, 16>}, {pipeline_mode = #tpu.pipeline_mode<synchronous>, transform_indices = @transform_2, window_bounds = array<i64: 16, 128>}, {pipeline_mode = #tpu.pipeline_mode<synchronous>, transform_indices = @transform_3, window_bounds = array<i64: 16, 128>}, {pipeline_mode = #tpu.pipeline_mode<synchronous>, transform_indices = @transform_4, window_bounds = array<i64: 128, 128>}, {pipeline_mode = #tpu.pipeline_mode<synchronous>, transform_indices = @transform_5, window_bounds = array<i64: 128, 128>}, {transform_indices = @transform_6, window_bounds = array<i64: 1, 512, 128>}]} {
    %c0 = arith.constant 0 : index
    %c0_0 = arith.constant 0 : index
    %0 = vector.load %arg2[%c0, %c0_0] : memref<4x128xf32, #tpu.memory_space<vmem>>, vector<4x128xf32>
    %1 = vector.extract_strided_slice %0 {offsets = [0, 0], sizes = [4, 1], strides = [1, 1]} : vector<4x128xf32> to vector<4x1xf32>
    %2 = vector.shape_cast %1 : vector<4x1xf32> to vector<4x1x1xf32>
    %c0_1 = arith.constant 0 : index
    %c0_2 = arith.constant 0 : index
    %c0_3 = arith.constant 0 : index
    %3 = vector.load %arg3[%c0_1, %c0_2, %c0_3] : memref<1x64x16xf32, #tpu.memory_space<vmem>>, vector<1x64x16xf32>
    %4 = vector.shape_cast %3 : vector<1x64x16xf32> to vector<64x16xf32>
    %5 = vector.shape_cast %4 : vector<64x16xf32> to vector<4x16x16xf32>
    %6 = vector.broadcast %2 : vector<4x1x1xf32> to vector<4x16x16xf32>
    %7 = arith.addf %5, %6 : vector<4x16x16xf32>
    %8 = vector.shape_cast %7 : vector<4x16x16xf32> to vector<64x16xf32>
    %c0_4 = arith.constant 0 : index
    %c0_5 = arith.constant 0 : index
    %9 = vector.load %arg4[%c0_4, %c0_5] : memref<16x128xf32, #tpu.memory_space<vmem>>, vector<16x128xf32>
    %cst = arith.constant dense<0.000000e+00> : vector<64x128xf32>
    %10 = tpu.matmul %8, %9, %cst {dimension_numbers = #tpu.dot_dimension_numbers<[1], [0], [0], [1], [0, 0, 1, 1], [], []>} : vector<64x16xf32>, vector<16x128xf32>, vector<64x128xf32> -> vector<64x128xf32>
    %11 = vector.shape_cast %10 : vector<64x128xf32> to vector<4x16x128xf32>
    %12 = tpu.transpose %11, [0, 2, 1] : vector<4x16x128xf32> -> vector<4x128x16xf32>
    %13 = vector.shape_cast %12 : vector<4x128x16xf32> to vector<512x16xf32>
    %c0_6 = arith.constant 0 : index
    %c0_7 = arith.constant 0 : index
    %14 = vector.load %arg5[%c0_6, %c0_7] : memref<16x128xf32, #tpu.memory_space<vmem>>, vector<16x128xf32>
    %cst_8 = arith.constant dense<0.000000e+00> : vector<512x128xf32>
    %15 = tpu.matmul %13, %14, %cst_8 {dimension_numbers = #tpu.dot_dimension_numbers<[1], [0], [0], [1], [0, 0, 1, 1], [], []>} : vector<512x16xf32>, vector<16x128xf32>, vector<512x128xf32> -> vector<512x128xf32>
    %cst_9 = arith.constant 0.000000e+00 : f32
    %16 = vector.broadcast %cst_9 : f32 to vector<512x128xf32>
    %17 = arith.cmpf oge, %15, %16 : vector<512x128xf32>
    %cst_10 = arith.constant 2.000000e-01 : f32
    %18 = vector.broadcast %cst_10 : f32 to vector<512x128xf32>
    %19 = arith.mulf %15, %18 : vector<512x128xf32>
    %20 = arith.select %17, %15, %19 : vector<512x128xi1>, vector<512x128xf32>
    %c0_11 = arith.constant 0 : index
    %c0_12 = arith.constant 0 : index
    %21 = vector.load %arg6[%c0_11, %c0_12] : memref<128x128xf32, #tpu.memory_space<vmem>>, vector<128x128xf32>
    %cst_13 = arith.constant dense<0.000000e+00> : vector<512x128xf32>
    %22 = tpu.matmul %20, %21, %cst_13 {dimension_numbers = #tpu.dot_dimension_numbers<[1], [0], [0], [1], [0, 0, 1, 1], [], []>} : vector<512x128xf32>, vector<128x128xf32>, vector<512x128xf32> -> vector<512x128xf32>
    %23 = vector.shape_cast %22 : vector<512x128xf32> to vector<4x128x128xf32>
    %24 = tpu.transpose %23, [0, 2, 1] : vector<4x128x128xf32> -> vector<4x128x128xf32>
    %25 = vector.shape_cast %24 : vector<4x128x128xf32> to vector<512x128xf32>
    %c0_14 = arith.constant 0 : index
    %c0_15 = arith.constant 0 : index
    %26 = vector.load %arg7[%c0_14, %c0_15] : memref<128x128xf32, #tpu.memory_space<vmem>>, vector<128x128xf32>
    %cst_16 = arith.constant dense<0.000000e+00> : vector<512x128xf32>
    %27 = tpu.matmul %25, %26, %cst_16 {dimension_numbers = #tpu.dot_dimension_numbers<[1], [0], [0], [1], [0, 0, 1, 1], [], []>} : vector<512x128xf32>, vector<128x128xf32>, vector<512x128xf32> -> vector<512x128xf32>
    %c0_17 = arith.constant 0 : index
    %c0_18 = arith.constant 0 : index
    %c0_19 = arith.constant 0 : index
    %28 = vector.load %arg8[%c0_17, %c0_18, %c0_19] : memref<1x512x128xf32, #tpu.memory_space<vmem>>, vector<1x512x128xf32>
    %29 = vector.shape_cast %28 : vector<1x512x128xf32> to vector<512x128xf32>
    %30 = vector.shape_cast %27 : vector<512x128xf32> to vector<1x512x128xf32>
    tpu.vector_store %arg8[%c0_17, %c0_18, %c0_19], %30 {strides = array<i32>} : memref<1x512x128xf32, #tpu.memory_space<vmem>>, vector<1x512x128xf32>,
    return
  }
  func.func @transform_0(%arg0: i32, %arg1: i32) -> (i32, i32) {
    %c0_i32 = arith.constant 0 : i32
    %c0_i32_0 = arith.constant 0 : i32
    return %arg1, %c0_i32 : i32, i32
  }
  func.func @transform_1(%arg0: i32, %arg1: i32) -> (i32, i32, i32) {
    %c0_i32 = arith.constant 0 : i32
    %c0_i32_0 = arith.constant 0 : i32
    return %arg0, %arg1, %c0_i32 : i32, i32, i32
  }
  func.func @transform_2(%arg0: i32, %arg1: i32) -> (i32, i32) {
    %c0_i32 = arith.constant 0 : i32
    %c0_i32_0 = arith.constant 0 : i32
    %c0_i32_1 = arith.constant 0 : i32
    return %c0_i32, %c0_i32_0 : i32, i32
  }
  func.func @transform_3(%arg0: i32, %arg1: i32) -> (i32, i32) {
    %c0_i32 = arith.constant 0 : i32
    %c0_i32_0 = arith.constant 0 : i32
    %c0_i32_1 = arith.constant 0 : i32
    return %c0_i32, %c0_i32_0 : i32, i32
  }
  func.func @transform_4(%arg0: i32, %arg1: i32) -> (i32, i32) {
    %c0_i32 = arith.constant 0 : i32
    %c0_i32_0 = arith.constant 0 : i32
    %c0_i32_1 = arith.constant 0 : i32
    return %c0_i32, %c0_i32_0 : i32, i32
  }
  func.func @transform_5(%arg0: i32, %arg1: i32) -> (i32, i32) {
    %c0_i32 = arith.constant 0 : i32
    %c0_i32_0 = arith.constant 0 : i32
    %c0_i32_1 = arith.constant 0 : i32
    return %c0_i32, %c0_i32_0 : i32, i32
  }
  func.func @transform_6(%arg0: i32, %arg1: i32) -> (i32, i32, i32) {
    %c0_i32 = arith.constant 0 : i32
    %c0_i32_0 = arith.constant 0 : i32
    return %arg0, %arg1, %c0_i32 : i32, i32, i32
  }
}

</mosaic_0001>

<bundles_post_ra>
// kernel: tpu_custom_call.1
= control target key start
LH: loop header
LB: loop body
LE: loop exit
PB: predicated region body
PF: predicated region fallthrough
CT: control target
= control target key end

     0   :  { %11 = vsyncpa [#allocation3], 0  ;;  %s3968_s0 = inlined_call_operand.vmem [shape: f32[4,128], index: 0, kind: input, shape index: {}]   ;;  %s3969_s1 = inlined_call_operand.vmem [shape: f32[2,64,16], index: 1, kind: input, shape index: {}]   ;;  %s3970_s2 = inlined_call_operand.vmem [shape: f32[16,128], index: 2, kind: input, shape index: {}]   ;;  %s3971_s3 = inlined_call_operand.vmem [shape: f32[16,128], index: 3, kind: input, shape index: {}]   ;;  %s3972_s4 = inlined_call_operand.vmem [shape: f32[128,128], index: 4, kind: input, shape index: {}]   ;;  %s3973_s5 = inlined_call_operand.hbm [shape: f32[128,128], index: 5, kind: input, shape index: {}]   ;;  %s3974_s6 = inlined_call_operand.hbm [shape: f32[2,512,128], index: 6, kind: output, shape index: {}]  }
   0x1   :  { %12 = vsyncpa [#allocation4], 0 }
   0x2   :  { %14 = vsyncpa [#allocation4 + $0x1], 0  ;;  %s3537_s21 = smov 0   ;;  %s3539_s22 = smov 0  }
   0x3   :  { %s3541_s23 = smov 0   ;;  %s3543_s24 = smov 0  }
   0x4   :  { %s3545_s25 = smov 0   ;;  %s3547_s26 = smov 0  }
   0x5 LB: > { %s2534_s27 = sadd.s32 4294967295, %s3492_s26   ;;  %s2535_s28 = sadd.s32 4294967294, %s3492_s26   ;;  %s3492_s26 = sphi %s3547_s26, %s20_s26   ;;  %s3488_s25 = sphi %s3545_s25, %s3992_s25   ;;  %s3484_s24 = sphi %s3543_s24, %s3991_s24   ;;  %s3480_s23 = sphi %s3541_s23, %s3990_s23   ;;  %s3476_s22 = sphi %s3539_s22, %s3989_s22   ;;  %s3472_s21 = sphi %s3537_s21, %s3988_s21  }
   0x6   : > { %s32_s29 = sadd.s32 1, %s3488_s25  ;;  %s179_s30 = sadd.s32 1, %s3480_s23 }
   0x7   : > { %p34_p0 = scmp.ge.s32.totalorder %s32_s29, 2  ;;  %p189_p1 = scmp.ne.s32.totalorder %s3480_s23, %s3476_s22 }
   0x8   : > { %p190_p2 = scmp.eq.s32.totalorder %s2534_s27, 1  ;;  %p195_p3 = scmp.ne.s32.totalorder %s3476_s22, %s3472_s21 }
   0x9   : > { %s3994_s29 = smov (%p34_p0, %s32_s29), 0  ;;  %p196_p5 = scmp.eq.s32.totalorder %s2535_s28, 1 }
   0xa   : > { %p3577_p4 = por %p190_p2, %p189_p1  ;;  %s174_s8 = ssub.s32 %s3488_s25, %s3994_s29 }
   0xb   : > { %p2536_p6 = scmp.ge.s32.totalorder %s3492_s26, 1  ;;  %p177_p7 = scmp.eq.s32.totalorder %s174_s8, 0 }
   0xc   : > { %s3979_s7 = scalar_select %p3577_p4, 1, 0 }
   0xd   : > { %p3584_p8 = por %p196_p5, %p195_p3  ;;  %p203_p9 = scmp.lt.s32.totalorder %s3492_s26, 3 }
   0xe   : > { %s3590_s10 = scalar_select %p177_p7, %s3480_s23, %s179_s30  }
   0xf   : > { %s3980_s9 = scalar_select %p3584_p8, 1, 0 }
  0x10   : > { %p3592_p10 = pnand %p2536_p6, %p203_p9  ;;  %p3596_p11 = scmp.eq.s32.totalorder %s2534_s27, 0 }
  0x11   : > { %s3494_s13 = smov [#allocation2]   ;;  %s3382_s18 = scalar_lea.hbm %s3973_s5, 2048 }
  0x12   : > { %s3981_s11 = scalar_select %p3592_p10, 1, 0 }
  0x13   : > { %s3982_s12 = scalar_select %p3596_p11, 1, 0 }
  0x14   : > { %p3313_p12 = pneg %p3592_p10  ;;  %s231_s14 = sshll.u32 %s3494_s13, 4  ;;  %s232_s14 = int_to_ptr.vmem [resolvable:$true] %s231_s14 }
  0x15   : > { %p3383_p0 = scmp.ne.s32.totalorder %s3973_s5, %s3382_s18  ;;  %p3389_p5 = scmp.lt.u32.totalorder %s3382_s18, %s3973_s5 }
  0x16   : > { %p3604_p13 = pnand %p3596_p11, %p3313_p12 }
  0x18   : > { %p3384_p1 = pneg %p3604_p13 }
  0x1a   : > { %p3385_p2 = pnand %p3384_p1, %p3383_p0 }
  0x1c   : > { %p3386_p3 = pneg %p3385_p2 }
  0x1e   : > { %p3391_p6 = pnand %p3389_p5, %p3386_p3 }
  0x20   : > { %3394 = shalt.err (!%p3391_p6)
}
  0x21   : > { %s3395_s30 = scalar_lea.vmem %s232_s14, 2048  ;;  %p3403_p8 = scmp.lt.s32.totalorder %s232_s14, %s232_s14 }
  0x22   : > { %p3396_p7 = scmp.ne.s32.totalorder %s232_s14, %s3395_s30  ;;  %p3404_p4 = scmp.lt.s32.totalorder %s3395_s30, %s3395_s30 }
  0x24   : > { %p3398_p9 = pnand %p3396_p7, %p3384_p1  ;;  %p3405_p11 = por %p3404_p4, %p3403_p8 }
  0x26   : > { %p3399_p12 = pneg %p3398_p9 }
  0x28   : > { %p3406_p10 = pnand %p3405_p11, %p3399_p12 }
  0x2a   : > { %3409 = shalt.err (!%p3406_p10)
}
  0x2b   : > { %s3495_s8 = smov 128   ;;  %s3496_s13 = smov 8  }
  0x2c   : > { %3316 = dma.hbm_to_vmem [thread:$0]  (!%p3604_p13), %s3973_s5, 2048, %s232_s14, [#allocation3], %s3495_s8, %s3495_s8, %s3496_s13  }
  0x2d   : > { %p3984_p0 = scmp.ne.s32.totalorder %s3981_s11, 0 }
  0x2e   : > { %p3985_p2 = scmp.ne.s32.totalorder (!%p3984_p0), %s3982_s12, 0 }
  0x2f   : > { %260 = sbr.rel (%p3984_p0) target bundleno = 1514 (0x5ea), region = 44 }
  0x36   : > { %3463 = dma.done.wait (%p3985_p2), [#allocation3], 2048  }
  0x37   : > { %3465 = vsyncadd (%p3985_p2), [#allocation3], 4294965248  ;;  %v326_v0 = vlaneseq  ;;  %v3497_v1 = vmov 0   ;;  %v3498_v2 = vmov 1966171168   ;;  %v387_v9 = vld [vmem:[%s3970_s2] sm:$0xff] }
  0x38   : > { %3380 = vset.pattern.permute.xlu0 %v3497_v1  ;;  %v324_v3 = vunpack.c.l.s4 %v3498_v2  ;;  %3381 = vset.pattern.permute.xlu1 %v3497_v1  ;;  %v2545_v8 = vld.sshfl [vmem:[%s3968_s0] sm:$0x33 pattern:$0x75316420]  ;;  %v388_v10 = vld [vmem:[%s3970_s2 + $0x8] sm:$0xff]  ;;  %p303_p4 = scmp.lt.s32.totalorder %s3484_s24, 1 }
  0x39   : > { %v327_v4 = vshrl.u32 %v326_v0, 7  ;;  %v322_v12 = vcombine.high %v2545_v8, %v2545_v8  ;;  %v3233_v13 = vpack.c.bf16 %v388_v10, %v387_v9  ;;  %vm389_vm0 = vcmask 130048   ;;  %v647_v42 = vld [vmem:[%s3971_s3] sm:$0xff]  ;;  %v648_v43 = vld [vmem:[%s3971_s3 + $0x8] sm:$0xff]  ;;  %s295_s19 = sand.u32 1, %s3476_s22   ;;  %s2624_s28 = sshll.u32 %s3484_s24, 13 }
  0x3a   : > { %v325_v5 = vunpack.c.0.s8 %v324_v3  ;;  %s304_s20 = scalar_select %p303_p4, %s3484_s24, 1  ;;  %v3237_v45 = vpack.c.bf16 %v648_v43, %v647_v42  ;;  %v1418_v3 = vld [vmem:[%s3972_s4] sm:$0xff] }
  0x3b   : > { %v349_v7 = vsub.s32 0, %v327_v4  ;;  %3234 = vmatprep.subr.bf16.mxu0 %v3233_v13  ;;  %s3914_s16 = scalar_lea.hbm %s3974_s6, %s2624_s28  ;;  %s3922_s24 = scalar_lea.sflag [#allocation4], %s295_s19 }
  0x3c   : > { %v328_v6 = vsub.s32 %v325_v5, %v327_v4  ;;  %3236 = vmatpush3.bf16.msra.mxu0 %v3233_v13  ;;  %s2623_s27 = sshll.u32 %s304_s20, 6  ;;  %3305 = vmatprep.subr.bf16.mxu1 %v3237_v45  ;;  %v1419_v4 = vld [vmem:[%s3972_s4 + $0x8] sm:$0xff]  ;;  %v1420_v5 = vld [vmem:[%s3972_s4 + $0x10] sm:$0xff]  ;;  %s2542_s20 = sshll.u32 %s295_s19, 9 }
  0x3d   : > { %s310_s8 = scalar_lea.vmem %s3969_s1, %s2623_s27  ;;  %3238 = vmatprep.subr.bf16.mxu0 %v3237_v45  ;;  %3306 = vmatpush3.bf16.msra.mxu1 %v3237_v45  ;;  %s3845_s27 = scalar_lea.vmem [#allocation5], %s2542_s20 }
  0x3e   : > { %v329_v11 = vrot.slane %v2545_v8, %v328_v6  ;;  %v336_v15 = vrot.slane %v322_v12, %v328_v6  ;;  %v340_v21 = vld [vmem:[%s310_s8 + $0x8] sm:$0xff]  ;;  %v339_v22 = vld [vmem:[%s310_s8] sm:$0xff]  ;;  %v341_v26 = vld [vmem:[%s310_s8 + $0x10] sm:$0xff]  ;;  %v3241_v6 = vpack.c.bf16 %v1419_v4, %v1418_v3  ;;  %s2428_s30 = sshll.u32 %s3845_s27, 4  ;;  %p3986_p10 = scmp.ne.s32.totalorder %s3979_s7, 0  ;;  %s3916_s30 = int_to_ptr.vmem [resolvable:$true] %s2428_s30 }
  0x3f   : > { %v342_v27 = vld [vmem:[%s310_s8 + $0x18] sm:$0xff]  ;;  %v343_v28 = vld [vmem:[%s310_s8 + $0x20] sm:$0xff]  ;;  %v344_v33 = vld [vmem:[%s310_s8 + $0x28] sm:$0xff]  ;;  %s3410_s17 = scalar_lea.vmem %s3916_s30, 8192  ;;  %s3499_s14 = smov [#allocation5]  }
  0x40   : > { %v350_v14 = vrot.slane %v329_v11, %v349_v7  ;;  %v337_v16 = vcombine.high %v329_v11, %v329_v11  ;;  %v354_v17 = vrot.slane %v336_v15, %v349_v7  ;;  %v338_v19 = vcombine.high %v336_v15, %v336_v15  ;;  %v345_v35 = vld [vmem:[%s310_s8 + $0x30] sm:$0xff]  ;;  %v346_v38 = vld [vmem:[%s310_s8 + $0x38] sm:$0xff]  ;;  %v1422_v11 = vld [vmem:[%s3972_s4 + $0x20] sm:$0xff]  ;;  %p3411_p8 = scmp.ne.s32.totalorder %s3916_s30, %s3410_s17  ;;  %s3414_s15 = sshll.u32 %s3499_s14, 4  ;;  %s3415_s15 = int_to_ptr.vmem [resolvable:$false] %s3414_s15 }
  0x41   : > { %v1423_v12 = vld [vmem:[%s3972_s4 + $0x28] sm:$0xff]  ;;  %s3416_s11 = scalar_lea.vmem %s3415_s15, 16384  ;;  %p3417_p1 = scmp.lt.s32.totalorder %s3916_s30, %s3415_s15 }
  0x42   : > { %364 = vperm.xlu0 %3380, %v350_v14   ;;  %v358_v18 = vrot.slane %v337_v16, %v349_v7  ;;  %v362_v20 = vrot.slane %v338_v19, %v349_v7  ;;  %v1421_v7 = vld [vmem:[%s3972_s4 + $0x18] sm:$0xff]  ;;  %v3249_v13 = vpack.c.bf16 %v1423_v12, %v1422_v11  ;;  %v1424_v16 = vld [vmem:[%s3972_s4 + $0x30] sm:$0xff]  ;;  %p3412_p11 = pnand %p3411_p8, %p3986_p10  ;;  %p3418_p3 = scmp.lt.s32.totalorder %s3416_s11, %s3410_s17 }
  0x43   : > { %v3245_v8 = vpack.c.bf16 %v1421_v7, %v1420_v5 }
  0x44   : > { %372 = vperm.xlu1 %3381, %v358_v18   ;;  %p3413_p13 = pneg %p3412_p11  ;;  %p3419_p5 = por %p3418_p3, %p3417_p1 }
  0x46   : > { %368 = vperm.xlu0 %3380, %v354_v17   ;;  %v1425_v17 = vld [vmem:[%s3972_s4 + $0x38] sm:$0xff]  ;;  %p3420_p6 = pnand %p3419_p5, %p3413_p13 }
  0x47   : > { %v3253_v18 = vpack.c.bf16 %v1425_v17, %v1424_v16 }
  0x48   : > { %376 = vperm.xlu1 %3381, %v362_v20  }
  0xc1   : > { %v365_v23 = vpop.permute.xlu0 %364 }
  0xc2   : > { %v380_v24 = vadd.f32 %v365_v23, %v340_v21  ;;  %v379_v25 = vadd.f32 %v365_v23, %v339_v22  ;;  %v1426_v21 = vld [vmem:[%s3972_s4 + $0x40] sm:$0xff]  ;;  %v1427_v22 = vld [vmem:[%s3972_s4 + $0x48] sm:$0xff] }
  0xc3   : > { %v373_v29 = vpop.permute.xlu1 %372  ;;  %v3257_v23 = vpack.c.bf16 %v1427_v22, %v1426_v21 }
  0xc4   : > { %2865 = vmatprep.mubr.msk.f32.mxu0 %vm389_vm0, %v379_v25  ;;  %v383_v34 = vadd.f32 %v373_v29, %v343_v28  ;;  %v384_v37 = vadd.f32 %v373_v29, %v344_v33 }
  0xc5   : > { %2866 = vmatmul.mubr.msk.f32.vlgmr.msra.gmra.mrb[0].mxu0 %vm389_vm0, %v380_v24  ;;  %v369_v30 = vpop.permute.xlu0 %368 }
  0xc6   : > { %v381_v31 = vadd.f32 %v369_v30, %v341_v26  ;;  %v382_v32 = vadd.f32 %v369_v30, %v342_v27  ;;  %3240 = vmatpush3.bf16.msra.mxu0 %v3237_v45  ;;  %v1428_v26 = vld [vmem:[%s3972_s4 + $0x50] sm:$0xff]  ;;  %v1429_v27 = vld [vmem:[%s3972_s4 + $0x58] sm:$0xff] }
  0xc7   : > { %v377_v36 = vpop.permute.xlu1 %376  ;;  %3242 = vmatprep.subr.bf16.mxu0 %v3241_v6  ;;  %v3261_v28 = vpack.c.bf16 %v1429_v27, %v1428_v26 }
  0xc8   : > { %2868 = vmatprep.mubr.msk.f32.mxu0 %vm389_vm0, %v381_v31  ;;  %v385_v39 = vadd.f32 %v377_v36, %v345_v35  ;;  %v386_v40 = vadd.f32 %v377_v36, %v346_v38  ;;  %v1430_v31 = vld [vmem:[%s3972_s4 + $0x60] sm:$0xff] }
  0xc9   : > { %2869 = vmatmul.mubr.msk.f32.gmra.mrb[2].mxu0 %vm389_vm0, %v382_v32  ;;  %v1431_v32 = vld [vmem:[%s3972_s4 + $0x68] sm:$0xff] }
  0xca   : > { %2871 = vmatprep.mubr.msk.f32.mxu0 %vm389_vm0, %v383_v34  ;;  %v3265_v33 = vpack.c.bf16 %v1431_v32, %v1430_v31 }
  0xcd   : > { %2872 = vmatmul.mubr.msk.f32.gmra.mrb[4].mxu0 %vm389_vm0, %v384_v37 }
  0xce   : > { %2874 = vmatprep.mubr.msk.f32.mxu0 %vm389_vm0, %v385_v39 }
  0xd1   : > { %2875 = vmatmul.mubr.msk.f32.gmra.mrb[6].mxu0 %vm389_vm0, %v386_v40 }
 0x198   : > { %v2867_v41 = vpop.f32.mrb[0].mxu0 }
 0x199   : > { %v480_v44 = vpop.f32.mrb[1].mxu0 }
 0x19a   : > { %519 = vxpose.xlu0.b32.start [1/2] (short) %v480_v44, 128 }
 0x19c   : > { %v2870_v46 = vpop.f32.mrb[2].mxu0 }
 0x19d   : > { %v490_v47 = vpop.f32.mrb[3].mxu0 }
 0x19e   : > { %520 = vxpose.xlu0.b32.end [2/2] (short) %v2867_v41, 128  ;;  %551 = vxpose.xlu1.b32.start [1/2] (short) %v490_v47, 128 }
 0x1a0   : > { %v2873_v48 = vpop.f32.mrb[4].mxu0 }
 0x1a1   : > { %v500_v49 = vpop.f32.mrb[5].mxu0 }
 0x1a2   : > { %552 = vxpose.xlu1.b32.end [2/2] (short) %v2870_v46, 128 }
 0x1a4   : > { %v2876_v50 = vpop.f32.mrb[6].mxu0 }
 0x1a5   : > { %v510_v51 = vpop.f32.mrb[7].mxu0 }
 0x1d7   : > { %583 = vxpose.xlu0.b32.start [1/2] (short) %v500_v49, 128 }
 0x1db   : > { %584 = vxpose.xlu0.b32.end [2/2] (short) %v2873_v48, 128  ;;  %615 = vxpose.xlu1.b32.start [1/2] (short) %v510_v51, 128  ;;  %v1432_v51 = vld [vmem:[%s3972_s4 + $0x70] sm:$0xff] }
 0x1df   : > { %616 = vxpose.xlu1.b32.end [2/2] (short) %v2876_v50, 128 }
 0x21a   : > { %v535_v52 = vpop.trf.xlu0 }
 0x21b   : > { %2881 = vmatprep.mubr.msk.f32.mxu0 %vm389_vm0, %v535_v52  ;;  %v1433_v52 = vld [vmem:[%s3972_s4 + $0x78] sm:$0xff] }
 0x21e   : > { %v536_v53 = vpop.trf.xlu0  ;;  %v3659_v54 = vpop.trf.xlu1 }
 0x21f   : > { %2882 = vmatmul.mubr.msk.f32.vlgmr.msra.gmra.mrb[8].mxu0 %vm389_vm0, %v536_v53 }
 0x220   : > { %3244 = vmatpush3.bf16.msra.mxu0 %v3241_v6 }
 0x221   : > { %3246 = vmatprep.subr.bf16.mxu0 %v3245_v8 }
 0x222   : > { %v537_v55 = vpop.trf.xlu0  ;;  %v3662_v56 = vpop.trf.xlu1 }
 0x223   : > { %2884 = vmatprep.mubr.msk.f32.mxu0 %vm389_vm0, %v537_v55  ;;  %v3269_v55 = vpack.c.bf16 %v1433_v52, %v1432_v51 }
 0x224   : > { %3248 = vmatpush3.bf16.msra.mxu0 %v3245_v8 }
 0x225   : > { %3250 = vmatprep.subr.bf16.mxu0 %v3249_v13 }
 0x226   : > { %v538_v57 = vpop.trf.xlu0  ;;  %v3665_v58 = vpop.trf.xlu1 }
 0x227   : > { %2885 = vmatmul.mubr.msk.f32.gmra.mrb[10].mxu0 %vm389_vm0, %v538_v57 }
 0x228   : > { %3252 = vmatpush3.bf16.msra.mxu0 %v3249_v13 }
 0x229   : > { %3254 = vmatprep.subr.bf16.mxu0 %v3253_v18 }
 0x22a   : > { %v539_v59 = vpop.trf.xlu0  ;;  %v3668_v60 = vpop.trf.xlu1 }
 0x22b   : > { %2887 = vmatprep.mubr.msk.f32.mxu0 %vm389_vm0, %v539_v59 }
 0x22c   : > { %3256 = vmatpush3.bf16.msra.mxu0 %v3253_v18 }
 0x22d   : > { %3258 = vmatprep.subr.bf16.mxu0 %v3257_v23 }
 0x22e   : > { %v540_v61 = vpop.trf.xlu0  ;;  %v3671_v62 = vpop.trf.xlu1 }
 0x22f   : > { %2888 = vmatmul.mubr.msk.f32.gmra.mrb[12].mxu0 %vm389_vm0, %v540_v61 }
 0x230   : > { %3260 = vmatpush3.bf16.msra.mxu0 %v3257_v23 }
 0x231   : > { %3262 = vmatprep.subr.bf16.mxu0 %v3261_v28 }
 0x232   : > { %v541_v63 = vpop.trf.xlu0  ;;  %v3674_v0 = vpop.trf.xlu1 }
 0x233   : > { %2890 = vmatprep.mubr.msk.f32.mxu0 %vm389_vm0, %v541_v63 }
 0x234   : > { %3264 = vmatpush3.bf16.msra.mxu0 %v3261_v28 }
 0x235   : > { %3266 = vmatprep.subr.bf16.mxu0 %v3265_v33 }
 0x236   : > { %v542_v1 = vpop.trf.xlu0  ;;  %v3677_v2 = vpop.trf.xlu1 }
 0x237   : > { %2891 = vmatmul.mubr.msk.f32.gmra.mrb[14].mxu0 %vm389_vm0, %v542_v1 }
 0x238   : > { %3268 = vmatpush3.bf16.msra.mxu0 %v3265_v33 }
 0x239   : > { %3270 = vmatprep.subr.bf16.mxu0 %v3269_v55 }
 0x23a   : > { %v543_v9 = vpop.trf.xlu0  ;;  %v3692_v10 = vpop.trf.xlu1 }
 0x23b   : > { %2893 = vmatprep.mubr.msk.f32.mxu0 %vm389_vm0, %v543_v9 }
 0x23c   : > { %3272 = vmatpush3.bf16.msra.mxu0 %v3269_v55 }
 0x23e   : > { %v544_v14 = vpop.trf.xlu0  ;;  %v3701_v15 = vpop.trf.xlu1 }
 0x23f   : > { %2894 = vmatmul.mubr.msk.f32.gmra.mrb[16].mxu0 %vm389_vm0, %v544_v14 }
 0x242   : > { %v545_v19 = vpop.trf.xlu0  ;;  %v576_v20 = vpop.trf.xlu1 }
 0x243   : > { %2896 = vmatprep.mubr.msk.f32.mxu0 %vm389_vm0, %v545_v19 }
 0x246   : > { %v546_v24 = vpop.trf.xlu0  ;;  %v577_v25 = vpop.trf.xlu1 }
 0x247   : > { %2897 = vmatmul.mubr.msk.f32.gmra.mrb[18].mxu0 %vm389_vm0, %v546_v24 }
 0x24a   : > { %v547_v29 = vpop.trf.xlu0  ;;  %v578_v30 = vpop.trf.xlu1 }
 0x24b   : > { %2899 = vmatprep.mubr.msk.f32.mxu0 %vm389_vm0, %v547_v29 }
 0x24e   : > { %v548_v34 = vpop.trf.xlu0  ;;  %v579_v35 = vpop.trf.xlu1 }
 0x24f   : > { %2900 = vmatmul.mubr.msk.f32.gmra.mrb[20].mxu0 %vm389_vm0, %v548_v34  ;;  %2923 = vmatprep.mubr.msk.f32.mxu1 %vm389_vm0, %v579_v35 }
 0x252   : > { %v549_v36 = vpop.trf.xlu0  ;;  %v580_v37 = vpop.trf.xlu1 }
 0x253   : > { %2902 = vmatprep.mubr.msk.f32.mxu0 %vm389_vm0, %v549_v36  ;;  %2924 = vmatmul.mubr.msk.f32.vlgmr.msra.gmra.mrb[0].mxu1 %vm389_vm0, %v580_v37 }
 0x256   : > { %v550_v38 = vpop.trf.xlu0  ;;  %v581_v39 = vpop.trf.xlu1 }
 0x257   : > { %2903 = vmatmul.mubr.msk.f32.gmra.mrb[22].mxu0 %vm389_vm0, %v550_v38  ;;  %2926 = vmatprep.mubr.msk.f32.mxu1 %vm389_vm0, %v581_v39 }
 0x258   : > { %2905 = vmatprep.mubr.msk.f32.mxu0 %vm389_vm0, %v3659_v54 }
 0x25a   : > { %v599_v40 = vpop.trf.xlu0  ;;  %v582_v41 = vpop.trf.xlu1 }
 0x25b   : > { %2906 = vmatmul.mubr.msk.f32.gmra.mrb[24].mxu0 %vm389_vm0, %v3662_v56  ;;  %2927 = vmatmul.mubr.msk.f32.gmra.mrb[2].mxu1 %vm389_vm0, %v582_v41 }
 0x25c   : > { %2908 = vmatprep.mubr.msk.f32.mxu0 %vm389_vm0, %v3665_v58  ;;  %2929 = vmatprep.mubr.msk.f32.mxu1 %vm389_vm0, %v599_v40 }
 0x25e   : > { %v600_v42 = vpop.trf.xlu0  ;;  %v631_v43 = vpop.trf.xlu1 }
 0x25f   : > { %2909 = vmatmul.mubr.msk.f32.gmra.mrb[26].mxu0 %vm389_vm0, %v3668_v60  ;;  %2930 = vmatmul.mubr.msk.f32.gmra.mrb[4].mxu1 %vm389_vm0, %v600_v42 }
 0x260   : > { %2911 = vmatprep.mubr.msk.f32.mxu0 %vm389_vm0, %v3671_v62 }
 0x262   : > { %v601_v44 = vpop.trf.xlu0  ;;  %v632_v45 = vpop.trf.xlu1 }
 0x263   : > { %2912 = vmatmul.mubr.msk.f32.gmra.mrb[28].mxu0 %vm389_vm0, %v3674_v0  ;;  %2932 = vmatprep.mubr.msk.f32.mxu1 %vm389_vm0, %v601_v44 }
 0x264   : > { %2914 = vmatprep.mubr.msk.f32.mxu0 %vm389_vm0, %v3677_v2 }
 0x266   : > { %v602_v46 = vpop.trf.xlu0  ;;  %v633_v47 = vpop.trf.xlu1 }
 0x267   : > { %2915 = vmatmul.mubr.msk.f32.gmra.mrb[30].mxu0 %vm389_vm0, %v3692_v10  ;;  %2933 = vmatmul.mubr.msk.f32.gmra.mrb[6].mxu1 %vm389_vm0, %v602_v46 }
 0x268   : > { %2917 = vmatprep.mubr.msk.f32.mxu0 %vm389_vm0, %v3701_v15 }
 0x26a   : > { %v603_v48 = vpop.trf.xlu0  ;;  %v634_v49 = vpop.trf.xlu1 }
 0x26b   : > { %2918 = vmatmul.mubr.msk.f32.gmra.mrb[32].mxu0 %vm389_vm0, %v576_v20  ;;  %2935 = vmatprep.mubr.msk.f32.mxu1 %vm389_vm0, %v603_v48 }
 0x26c   : > { %2920 = vmatprep.mubr.msk.f32.mxu0 %vm389_vm0, %v577_v25 }
 0x26e   : > { %v604_v50 = vpop.trf.xlu0  ;;  %v635_v54 = vpop.trf.xlu1 }
 0x26f   : > { %2921 = vmatmul.mubr.msk.f32.gmra.mrb[34].mxu0 %vm389_vm0, %v578_v30  ;;  %2936 = vmatmul.mubr.msk.f32.gmra.mrb[8].mxu1 %vm389_vm0, %v604_v50 }
 0x272   : > { %v605_v53 = vpop.trf.xlu0  ;;  %v636_v57 = vpop.trf.xlu1 }
 0x273   : > { %2938 = vmatprep.mubr.msk.f32.mxu1 %vm389_vm0, %v605_v53 }
 0x276   : > { %v606_v56 = vpop.trf.xlu0  ;;  %v637_v60 = vpop.trf.xlu1 }
 0x277   : > { %2939 = vmatmul.mubr.msk.f32.gmra.mrb[10].mxu1 %vm389_vm0, %v606_v56 }
 0x27a   : > { %v607_v58 = vpop.trf.xlu0  ;;  %v638_v62 = vpop.trf.xlu1 }
 0x27b   : > { %2941 = vmatprep.mubr.msk.f32.mxu1 %vm389_vm0, %v607_v58 }
 0x27e   : > { %v608_v59 = vpop.trf.xlu0  ;;  %v639_v1 = vpop.trf.xlu1 }
 0x27f   : > { %2942 = vmatmul.mubr.msk.f32.gmra.mrb[12].mxu1 %vm389_vm0, %v608_v59 }
 0x282   : > { %v609_v61 = vpop.trf.xlu0  ;;  %v640_v3 = vpop.trf.xlu1 }
 0x283   : > { %2944 = vmatprep.mubr.msk.f32.mxu1 %vm389_vm0, %v609_v61 }
 0x286   : > { %v610_v63 = vpop.trf.xlu0  ;;  %v641_v6 = vpop.trf.xlu1 }
 0x287   : > { %2945 = vmatmul.mubr.msk.f32.gmra.mrb[14].mxu1 %vm389_vm0, %v610_v63 }
 0x28a   : > { %v611_v0 = vpop.trf.xlu0  ;;  %v642_v7 = vpop.trf.xlu1 }
 0x28b   : > { %2947 = vmatprep.mubr.msk.f32.mxu1 %vm389_vm0, %v611_v0 }
 0x28e   : > { %v612_v2 = vpop.trf.xlu0  ;;  %v643_v8 = vpop.trf.xlu1 }
 0x28f   : > { %2948 = vmatmul.mubr.msk.f32.gmra.mrb[16].mxu1 %vm389_vm0, %v612_v2 }
 0x292   : > { %v613_v4 = vpop.trf.xlu0  ;;  %v644_v9 = vpop.trf.xlu1 }
 0x293   : > { %2950 = vmatprep.mubr.msk.f32.mxu1 %vm389_vm0, %v613_v4 }
 0x296   : > { %v614_v5 = vpop.trf.xlu0  ;;  %v645_v10 = vpop.trf.xlu1 }
 0x297   : > { %2951 = vmatmul.mubr.msk.f32.gmra.mrb[18].mxu1 %vm389_vm0, %v614_v5 }
 0x298   : > { %2953 = vmatprep.mubr.msk.f32.mxu1 %vm389_vm0, %v631_v43 }
 0x29a   : > { %v646_v11 = vpop.trf.xlu1 }
 0x29b   : > { %2954 = vmatmul.mubr.msk.f32.gmra.mrb[20].mxu1 %vm389_vm0, %v632_v45 }
 0x29c   : > { %2956 = vmatprep.mubr.msk.f32.mxu1 %vm389_vm0, %v633_v47 }
 0x29f   : > { %2957 = vmatmul.mubr.msk.f32.gmra.mrb[22].mxu1 %vm389_vm0, %v634_v49 }
 0x2a0   : > { %2959 = vmatprep.mubr.msk.f32.mxu1 %vm389_vm0, %v635_v54 }
 0x2a3   : > { %2960 = vmatmul.mubr.msk.f32.gmra.mrb[24].mxu1 %vm389_vm0, %v636_v57 }
 0x2a4   : > { %2962 = vmatprep.mubr.msk.f32.mxu1 %vm389_vm0, %v637_v60 }
 0x2a7   : > { %2963 = vmatmul.mubr.msk.f32.gmra.mrb[26].mxu1 %vm389_vm0, %v638_v62 }
 0x2a8   : > { %2965 = vmatprep.mubr.msk.f32.mxu1 %vm389_vm0, %v639_v1 }
 0x2ab   : > { %2966 = vmatmul.mubr.msk.f32.gmra.mrb[28].mxu1 %vm389_vm0, %v640_v3 }
 0x2ac   : > { %2968 = vmatprep.mubr.msk.f32.mxu1 %vm389_vm0, %v641_v6 }
 0x2af   : > { %2969 = vmatmul.mubr.msk.f32.gmra.mrb[30].mxu1 %vm389_vm0, %v642_v7 }
 0x2b0   : > { %2971 = vmatprep.mubr.msk.f32.mxu1 %vm389_vm0, %v643_v8 }
 0x2b3   : > { %2972 = vmatmul.mubr.msk.f32.gmra.mrb[32].mxu1 %vm389_vm0, %v644_v9 }
 0x2b4   : > { %2974 = vmatprep.mubr.msk.f32.mxu1 %vm389_vm0, %v645_v10 }
 0x2b7   : > { %2975 = vmatmul.mubr.msk.f32.gmra.mrb[34].mxu1 %vm389_vm0, %v646_v11 }
 0x2f2   : > { %v2883_v12 = vpop.f32.mrb[8].mxu0 }
 0x2f3   : > { %v1291_v13 = vmul.f32 0.2, %v2883_v12  ;;  %v907_v14 = vpop.f32.mrb[9].mxu0  ;;  %vm1227_vm1 = vcmp.ge.f32.partialorder %v2883_v12, 0.0 }
 0x2f4   : > { %vm1226_vm2 = vcmp.ge.f32.partialorder %v907_v14, 0.0  ;;  %v1290_v15 = vmul.f32 0.2, %v907_v14 }
 0x2f5   : > { %v1355_v17 = vsel %vm1227_vm1, %v2883_v12, %v1291_v13 }
 0x2f6   : > { %v1354_v16 = vsel %vm1226_vm2, %v907_v14, %v1290_v15 }
 0x2f7   : > { %3009 = vmatprep.mubr.f32.mxu0 %v1354_v16 }
 0x2f8   : > { %3010 = vmatmul.mubr.f32.vlgmr.msra.gmra.mrb[36].mxu0 %v1355_v17 }
 0x2fa   : > { %v2886_v18 = vpop.f32.mrb[10].mxu0 }
 0x2fb   : > { %v1293_v19 = vmul.f32 0.2, %v2886_v18  ;;  %v917_v20 = vpop.f32.mrb[11].mxu0  ;;  %vm1229_vm3 = vcmp.ge.f32.partialorder %v2886_v18, 0.0 }
 0x2fc   : > { %vm1228_vm4 = vcmp.ge.f32.partialorder %v917_v20, 0.0  ;;  %v1292_v21 = vmul.f32 0.2, %v917_v20 }
 0x2fd   : > { %v1357_v23 = vsel %vm1229_vm3, %v2886_v18, %v1293_v19 }
 0x2fe   : > { %v1356_v22 = vsel %vm1228_vm4, %v917_v20, %v1292_v21 }
 0x2ff   : > { %3012 = vmatprep.mubr.f32.mxu0 %v1356_v22 }
 0x300   : > { %3013 = vmatmul.mubr.f32.gmra.mrb[38].mxu0 %v1357_v23 }
 0x302   : > { %v2889_v24 = vpop.f32.mrb[12].mxu0 }
 0x303   : > { %v1295_v25 = vmul.f32 0.2, %v2889_v24  ;;  %v927_v26 = vpop.f32.mrb[13].mxu0  ;;  %vm1231_vm5 = vcmp.ge.f32.partialorder %v2889_v24, 0.0 }
 0x304   : > { %vm1230_vm6 = vcmp.ge.f32.partialorder %v927_v26, 0.0  ;;  %v1294_v27 = vmul.f32 0.2, %v927_v26 }
 0x305   : > { %v1359_v29 = vsel %vm1231_vm5, %v2889_v24, %v1295_v25 }
 0x306   : > { %v1358_v28 = vsel %vm1230_vm6, %v927_v26, %v1294_v27 }
 0x307   : > { %3015 = vmatprep.mubr.f32.mxu0 %v1358_v28 }
 0x308   : > { %3016 = vmatmul.mubr.f32.gmra.mrb[40].mxu0 %v1359_v29 }
 0x30a   : > { %v2892_v30 = vpop.f32.mrb[14].mxu0 }
 0x30b   : > { %v1297_v31 = vmul.f32 0.2, %v2892_v30  ;;  %v937_v32 = vpop.f32.mrb[15].mxu0  ;;  %vm1233_vm7 = vcmp.ge.f32.partialorder %v2892_v30, 0.0 }
 0x30c   : > { %vm1232_vm8 = vcmp.ge.f32.partialorder %v937_v32, 0.0  ;;  %v1296_v33 = vmul.f32 0.2, %v937_v32 }
 0x30d   : > { %v1361_v35 = vsel %vm1233_vm7, %v2892_v30, %v1297_v31 }
 0x30e   : > { %v1360_v34 = vsel %vm1232_vm8, %v937_v32, %v1296_v33 }
 0x30f   : > { %3018 = vmatprep.mubr.f32.mxu0 %v1360_v34 }
 0x310   : > { %3019 = vmatmul.mubr.f32.gmra.mrb[42].mxu0 %v1361_v35 }
 0x312   : > { %v2895_v36 = vpop.f32.mrb[16].mxu0 }
 0x313   : > { %v1299_v37 = vmul.f32 0.2, %v2895_v36  ;;  %v947_v38 = vpop.f32.mrb[17].mxu0  ;;  %vm1235_vm9 = vcmp.ge.f32.partialorder %v2895_v36, 0.0 }
 0x314   : > { %vm1234_vm10 = vcmp.ge.f32.partialorder %v947_v38, 0.0  ;;  %v1298_v39 = vmul.f32 0.2, %v947_v38 }
 0x315   : > { %v1363_v41 = vsel %vm1235_vm9, %v2895_v36, %v1299_v37 }
 0x316   : > { %v1362_v40 = vsel %vm1234_vm10, %v947_v38, %v1298_v39 }
 0x317   : > { %3021 = vmatprep.mubr.f32.mxu0 %v1362_v40 }
 0x318   : > { %3022 = vmatmul.mubr.f32.gmra.mrb[44].mxu0 %v1363_v41 }
 0x31a   : > { %v2898_v42 = vpop.f32.mrb[18].mxu0 }
 0x31b   : > { %v1301_v43 = vmul.f32 0.2, %v2898_v42  ;;  %v957_v44 = vpop.f32.mrb[19].mxu0  ;;  %vm1237_vm11 = vcmp.ge.f32.partialorder %v2898_v42, 0.0 }
 0x31c   : > { %vm1236_vm12 = vcmp.ge.f32.partialorder %v957_v44, 0.0  ;;  %v1300_v45 = vmul.f32 0.2, %v957_v44 }
 0x31d   : > { %v1365_v47 = vsel %vm1237_vm11, %v2898_v42, %v1301_v43 }
 0x31e   : > { %v1364_v46 = vsel %vm1236_vm12, %v957_v44, %v1300_v45 }
 0x31f   : > { %3024 = vmatprep.mubr.f32.mxu0 %v1364_v46 }
 0x320   : > { %3025 = vmatmul.mubr.f32.gmra.mrb[46].mxu0 %v1365_v47 }
 0x322   : > { %v2901_v48 = vpop.f32.mrb[20].mxu0 }
 0x323   : > { %v1303_v49 = vmul.f32 0.2, %v2901_v48  ;;  %v967_v50 = vpop.f32.mrb[21].mxu0  ;;  %vm1239_vm13 = vcmp.ge.f32.partialorder %v2901_v48, 0.0 }
 0x324   : > { %vm1238_vm14 = vcmp.ge.f32.partialorder %v967_v50, 0.0  ;;  %v1302_v51 = vmul.f32 0.2, %v967_v50 }
 0x325   : > { %v1367_v54 = vsel %vm1239_vm13, %v2901_v48, %v1303_v49 }
 0x326   : > { %v1366_v52 = vsel %vm1238_vm14, %v967_v50, %v1302_v51  ;;  %v3797_v53 = vpop.f32.mrb[0].mxu1 }
 0x327   : > { %3027 = vmatprep.mubr.f32.mxu0 %v1366_v52  ;;  %v3799_v55 = vpop.f32.mrb[1].mxu1  ;;  %v1319_v43 = vmul.f32 0.2, %v3797_v53 }
 0x328   : > { %3028 = vmatmul.mubr.f32.gmra.mrb[48].mxu0 %v1367_v54  ;;  %v1318_v39 = vmul.f32 0.2, %v3799_v55  ;;  %vm1254_vm13 = vcmp.ge.f32.partialorder %v3799_v55, 0.0 }
 0x32a   : > { %v2904_v56 = vpop.f32.mrb[22].mxu0  ;;  %v1382_v45 = vsel %vm1254_vm13, %v3799_v55, %v1318_v39 }
 0x32b   : > { %v1305_v57 = vmul.f32 0.2, %v2904_v56  ;;  %v977_v58 = vpop.f32.mrb[23].mxu0  ;;  %vm1241_vm15 = vcmp.ge.f32.partialorder %v2904_v56, 0.0 }
 0x32c   : > { %vm1240_vm0 = vcmp.ge.f32.partialorder %v977_v58, 0.0  ;;  %v1304_v59 = vmul.f32 0.2, %v977_v58 }
 0x32d   : > { %v1369_v1 = vsel %vm1241_vm15, %v2904_v56, %v1305_v57  ;;  %vm1255_vm15 = vcmp.ge.f32.partialorder %v3797_v53, 0.0 }
 0x32e   : > { %v2907_v60 = vpop.f32.mrb[24].mxu0  ;;  %v1368_v61 = vsel %vm1240_vm0, %v977_v58, %v1304_v59  ;;  %v3801_v62 = vpop.f32.mrb[2].mxu1  ;;  %v1383_v50 = vsel %vm1255_vm15, %v3797_v53, %v1319_v43 }
 0x32f   : > { %v1307_v63 = vmul.f32 0.2, %v2907_v60  ;;  %v987_v0 = vpop.f32.mrb[25].mxu0  ;;  %3030 = vmatprep.mubr.f32.mxu0 %v1368_v61  ;;  %v3803_v2 = vpop.f32.mrb[3].mxu1  ;;  %vm1243_vm1 = vcmp.ge.f32.partialorder %v2907_v60, 0.0  ;;  %vm1257_vm0 = vcmp.ge.f32.partialorder %v3801_v62, 0.0 }
 0x330   : > { %vm1242_vm2 = vcmp.ge.f32.partialorder %v987_v0, 0.0  ;;  %v1306_v3 = vmul.f32 0.2, %v987_v0  ;;  %3031 = vmatmul.mubr.f32.gmra.mrb[50].mxu0 %v1369_v1  ;;  %v1320_v41 = vmul.f32 0.2, %v3803_v2  ;;  %vm1256_vm14 = vcmp.ge.f32.partialorder %v3803_v2, 0.0 }
 0x331   : > { %v1371_v7 = vsel %vm1243_vm1, %v2907_v60, %v1307_v63  ;;  %v1321_v49 = vmul.f32 0.2, %v3801_v62 }
 0x332   : > { %v2910_v4 = vpop.f32.mrb[26].mxu0  ;;  %v3805_v5 = vpop.f32.mrb[4].mxu1  ;;  %v1370_v6 = vsel %vm1242_vm2, %v987_v0, %v1306_v3  ;;  %v1384_v48 = vsel %vm1256_vm14, %v3803_v2, %v1320_v41 }
 0x333   : > { %3033 = vmatprep.mubr.f32.mxu0 %v1370_v6  ;;  %v1309_v8 = vmul.f32 0.2, %v2910_v4  ;;  %v997_v9 = vpop.f32.mrb[27].mxu0  ;;  %v3807_v10 = vpop.f32.mrb[5].mxu1  ;;  %vm1245_vm3 = vcmp.ge.f32.partialorder %v2910_v4, 0.0  ;;  %v1385_v54 = vsel %vm1257_vm0, %v3801_v62, %v1321_v49  ;;  %vm1259_vm2 = vcmp.ge.f32.partialorder %v3805_v5, 0.0 }
 0x334   : > { %3034 = vmatmul.mubr.f32.gmra.mrb[52].mxu0 %v1371_v7  ;;  %vm1244_vm4 = vcmp.ge.f32.partialorder %v997_v9, 0.0  ;;  %v1308_v11 = vmul.f32 0.2, %v997_v9  ;;  %v1322_v51 = vmul.f32 0.2, %v3807_v10  ;;  %vm1258_vm1 = vcmp.ge.f32.partialorder %v3807_v10, 0.0 }
 0x335   : > { %v1373_v17 = vsel %vm1245_vm3, %v2910_v4, %v1309_v8  ;;  %v1323_v52 = vmul.f32 0.2, %v3805_v5 }
 0x336   : > { %v2913_v12 = vpop.f32.mrb[28].mxu0  ;;  %v1372_v14 = vsel %vm1244_vm4, %v997_v9, %v1308_v11  ;;  %v1386_v56 = vsel %vm1258_vm1, %v3807_v10, %v1322_v51 }
 0x337   : > { %v1007_v13 = vpop.f32.mrb[29].mxu0  ;;  %v1311_v15 = vmul.f32 0.2, %v2913_v12  ;;  %3036 = vmatprep.mubr.f32.mxu0 %v1372_v14  ;;  %vm1247_vm6 = vcmp.ge.f32.partialorder %v2913_v12, 0.0  ;;  %v1387_v59 = vsel %vm1259_vm2, %v3805_v5, %v1323_v52 }
 0x338   : > { %vm1246_vm5 = vcmp.ge.f32.partialorder %v1007_v13, 0.0  ;;  %v1310_v16 = vmul.f32 0.2, %v1007_v13  ;;  %3037 = vmatmul.mubr.f32.gmra.mrb[54].mxu0 %v1373_v17 }
 0x339   : > { %v1375_v24 = vsel %vm1247_vm6, %v2913_v12, %v1311_v15 }
 0x33a   : > { %v2916_v18 = vpop.f32.mrb[30].mxu0  ;;  %v3809_v19 = vpop.f32.mrb[6].mxu1  ;;  %v1374_v20 = vsel %vm1246_vm5, %v1007_v13, %v1310_v16 }
 0x33b   : > { %3039 = vmatprep.mubr.f32.mxu0 %v1374_v20  ;;  %v1313_v21 = vmul.f32 0.2, %v2916_v18  ;;  %v1017_v22 = vpop.f32.mrb[31].mxu0  ;;  %v3811_v23 = vpop.f32.mrb[7].mxu1  ;;  %vm1249_vm7 = vcmp.ge.f32.partialorder %v2916_v18, 0.0  ;;  %vm1261_vm4 = vcmp.ge.f32.partialorder %v3809_v19, 0.0 }
 0x33c   : > { %vm1248_vm8 = vcmp.ge.f32.partialorder %v1017_v22, 0.0  ;;  %v1312_v25 = vmul.f32 0.2, %v1017_v22  ;;  %3040 = vmatmul.mubr.f32.gmra.mrb[56].mxu0 %v1375_v24  ;;  %v1324_v55 = vmul.f32 0.2, %v3811_v23  ;;  %vm1260_vm3 = vcmp.ge.f32.partialorder %v3811_v23, 0.0 }
 0x33d   : > { %v1377_v31 = vsel %vm1249_vm7, %v2916_v18, %v1313_v21  ;;  %v1325_v58 = vmul.f32 0.2, %v3809_v19 }
 0x33e   : > { %v2919_v26 = vpop.f32.mrb[32].mxu0  ;;  %v1376_v28 = vsel %vm1248_vm8, %v1017_v22, %v1312_v25  ;;  %v1388_v61 = vsel %vm1260_vm3, %v3811_v23, %v1324_v55 }
 0x33f   : > { %v1027_v27 = vpop.f32.mrb[33].mxu0  ;;  %v1315_v29 = vmul.f32 0.2, %v2919_v26  ;;  %3042 = vmatprep.mubr.f32.mxu0 %v1376_v28  ;;  %vm1251_vm10 = vcmp.ge.f32.partialorder %v2919_v26, 0.0  ;;  %v1389_v63 = vsel %vm1261_vm4, %v3809_v19, %v1325_v58 }
 0x340   : > { %vm1250_vm9 = vcmp.ge.f32.partialorder %v1027_v27, 0.0  ;;  %v1314_v30 = vmul.f32 0.2, %v1027_v27  ;;  %3043 = vmatmul.mubr.f32.gmra.mrb[58].mxu0 %v1377_v31 }
 0x341   : > { %v1379_v38 = vsel %vm1251_vm10, %v2919_v26, %v1315_v29 }
 0x342   : > { %v2922_v32 = vpop.f32.mrb[34].mxu0  ;;  %v3813_v33 = vpop.f32.mrb[8].mxu1  ;;  %v1378_v34 = vsel %vm1250_vm9, %v1027_v27, %v1314_v30 }
 0x343   : > { %3045 = vmatprep.mubr.f32.mxu0 %v1378_v34  ;;  %v1317_v35 = vmul.f32 0.2, %v2922_v32  ;;  %v1037_v36 = vpop.f32.mrb[35].mxu0  ;;  %v1087_v37 = vpop.f32.mrb[9].mxu1  ;;  %vm1253_vm11 = vcmp.ge.f32.partialorder %v2922_v32, 0.0  ;;  %vm1263_vm6 = vcmp.ge.f32.partialorder %v3813_v33, 0.0 }
 0x344   : > { %vm1252_vm12 = vcmp.ge.f32.partialorder %v1037_v36, 0.0  ;;  %v1316_v40 = vmul.f32 0.2, %v1037_v36  ;;  %3046 = vmatmul.mubr.f32.gmra.mrb[60].mxu0 %v1379_v38  ;;  %v1326_v60 = vmul.f32 0.2, %v1087_v37  ;;  %vm1262_vm5 = vcmp.ge.f32.partialorder %v1087_v37, 0.0 }
 0x345   : > { %v1381_v44 = vsel %vm1253_vm11, %v2922_v32, %v1317_v35  ;;  %v1327_v62 = vmul.f32 0.2, %v3813_v33 }
 0x346   : > { %v1380_v42 = vsel %vm1252_vm12, %v1037_v36, %v1316_v40  ;;  %v1390_v1 = vsel %vm1262_vm5, %v1087_v37, %v1326_v60 }
 0x347   : > { %3048 = vmatprep.mubr.f32.mxu0 %v1380_v42  ;;  %v1391_v5 = vsel %vm1263_vm6, %v3813_v33, %v1327_v62 }
 0x348   : > { %3049 = vmatmul.mubr.f32.gmra.mrb[62].mxu0 %v1381_v44 }
 0x349   : > { %3051 = vmatprep.mubr.f32.mxu0 %v1382_v45 }
 0x34a   : > { %v2940_v46 = vpop.f32.mrb[10].mxu1 }
 0x34b   : > { %v1097_v47 = vpop.f32.mrb[11].mxu1  ;;  %v1329_v4 = vmul.f32 0.2, %v2940_v46  ;;  %vm1265_vm8 = vcmp.ge.f32.partialorder %v2940_v46, 0.0 }
 0x34c   : > { %3052 = vmatmul.mubr.f32.gmra.mrb[64].mxu0 %v1383_v50  ;;  %v1328_v0 = vmul.f32 0.2, %v1097_v47  ;;  %vm1264_vm7 = vcmp.ge.f32.partialorder %v1097_v47, 0.0 }
 0x34d   : > { %3054 = vmatprep.mubr.f32.mxu0 %v1384_v48  ;;  %v1393_v9 = vsel %vm1265_vm8, %v2940_v46, %v1329_v4 }
 0x34e   : > { %v1392_v7 = vsel %vm1264_vm7, %v1097_v47, %v1328_v0 }
 0x350   : > { %3055 = vmatmul.mubr.f32.gmra.mrb[66].mxu0 %v1385_v54 }
 0x351   : > { %3057 = vmatprep.mubr.f32.mxu0 %v1386_v56 }
 0x352   : > { %v2943_v53 = vpop.f32.mrb[12].mxu1 }
 0x353   : > { %v1107_v57 = vpop.f32.mrb[13].mxu1  ;;  %v1331_v8 = vmul.f32 0.2, %v2943_v53  ;;  %vm1267_vm10 = vcmp.ge.f32.partialorder %v2943_v53, 0.0 }
 0x354   : > { %3058 = vmatmul.mubr.f32.gmra.mrb[68].mxu0 %v1387_v59  ;;  %v1330_v6 = vmul.f32 0.2, %v1107_v57  ;;  %vm1266_vm9 = vcmp.ge.f32.partialorder %v1107_v57, 0.0 }
 0x355   : > { %3060 = vmatprep.mubr.f32.mxu0 %v1388_v61  ;;  %v1395_v15 = vsel %vm1267_vm10, %v2943_v53, %v1331_v8 }
 0x356   : > { %v1394_v11 = vsel %vm1266_vm9, %v1107_v57, %v1330_v6 }
 0x358   : > { %3061 = vmatmul.mubr.f32.gmra.mrb[70].mxu0 %v1389_v63 }
 0x359   : > { %3063 = vmatprep.mubr.f32.mxu0 %v1390_v1 }
 0x35a   : > { %v2946_v2 = vpop.f32.mrb[14].mxu1 }
 0x35b   : > { %v1117_v3 = vpop.f32.mrb[15].mxu1  ;;  %v1333_v14 = vmul.f32 0.2, %v2946_v2  ;;  %vm1269_vm12 = vcmp.ge.f32.partialorder %v2946_v2, 0.0 }
 0x35c   : > { %3064 = vmatmul.mubr.f32.gmra.mrb[72].mxu0 %v1391_v5  ;;  %v1332_v10 = vmul.f32 0.2, %v1117_v3  ;;  %vm1268_vm11 = vcmp.ge.f32.partialorder %v1117_v3, 0.0 }
 0x35d   : > { %3066 = vmatprep.mubr.f32.mxu0 %v1392_v7  ;;  %v1397_v19 = vsel %vm1269_vm12, %v2946_v2, %v1333_v14 }
 0x35e   : > { %v1396_v17 = vsel %vm1268_vm11, %v1117_v3, %v1332_v10 }
 0x360   : > { %3067 = vmatmul.mubr.f32.gmra.mrb[74].mxu0 %v1393_v9 }
 0x361   : > { %3069 = vmatprep.mubr.f32.mxu0 %v1394_v11 }
 0x362   : > { %v2949_v12 = vpop.f32.mrb[16].mxu1 }
 0x363   : > { %v1127_v13 = vpop.f32.mrb[17].mxu1  ;;  %v1335_v18 = vmul.f32 0.2, %v2949_v12  ;;  %vm1271_vm14 = vcmp.ge.f32.partialorder %v2949_v12, 0.0 }
 0x364   : > { %v1334_v16 = vmul.f32 0.2, %v1127_v13  ;;  %3070 = vmatmul.mubr.f32.gmra.mrb[76].mxu0 %v1395_v15  ;;  %vm1270_vm13 = vcmp.ge.f32.partialorder %v1127_v13, 0.0  ;;  %v1949_v15 = vld [vmem:[#allocation2 + $0x10] sm:$0xff] }
 0x365   : > { %3072 = vmatprep.mubr.f32.mxu0 %v1396_v17  ;;  %v1399_v25 = vsel %vm1271_vm14, %v2949_v12, %v1335_v18  ;;  %v1947_v12 = vld [vmem:[#allocation2] sm:$0xff] }
 0x366   : > { %v1398_v20 = vsel %vm1270_vm13, %v1127_v13, %v1334_v16  ;;  %v1948_v13 = vld [vmem:[#allocation2 + $0x8] sm:$0xff]  ;;  %v1950_v16 = vld [vmem:[#allocation2 + $0x18] sm:$0xff] }
 0x367   : > { %v3273_v14 = vpack.c.bf16 %v1948_v13, %v1947_v12  ;;  %v3277_v18 = vpack.c.bf16 %v1950_v16, %v1949_v15 }
 0x368   : > { %3073 = vmatmul.mubr.f32.gmra.mrb[78].mxu0 %v1397_v19 }
 0x369   : > { %3075 = vmatprep.mubr.f32.mxu0 %v1398_v20  ;;  %3274 = vmatprep.subr.bf16.mxu1 %v3273_v14  ;;  %v1951_v20 = vld [vmem:[#allocation2 + $0x20] sm:$0xff] }
 0x36a   : > { %v2952_v21 = vpop.f32.mrb[18].mxu1  ;;  %3276 = vmatpush3.bf16.msra.mxu1 %v3273_v14 }
 0x36b   : > { %v1137_v22 = vpop.f32.mrb[19].mxu1  ;;  %v1337_v23 = vmul.f32 0.2, %v2952_v21  ;;  %vm1273_vm0 = vcmp.ge.f32.partialorder %v2952_v21, 0.0  ;;  %3278 = vmatprep.subr.bf16.mxu1 %v3277_v18 }
 0x36c   : > { %vm1272_vm15 = vcmp.ge.f32.partialorder %v1137_v22, 0.0  ;;  %v1336_v24 = vmul.f32 0.2, %v1137_v22  ;;  %3076 = vmatmul.mubr.f32.gmra.mrb[80].mxu0 %v1399_v25  ;;  %v1953_v25 = vld [vmem:[#allocation2 + $0x30] sm:$0xff] }
 0x36d   : > { %v1401_v31 = vsel %vm1273_vm0, %v2952_v21, %v1337_v23  ;;  %v1952_v21 = vld [vmem:[#allocation2 + $0x28] sm:$0xff] }
 0x36e   : > { %v2955_v26 = vpop.f32.mrb[20].mxu1  ;;  %v1400_v27 = vsel %vm1272_vm15, %v1137_v22, %v1336_v24  ;;  %3280 = vmatpush3.bf16.msra.mxu1 %v3277_v18  ;;  %v3281_v23 = vpack.c.bf16 %v1952_v21, %v1951_v20 }
 0x36f   : > { %v1147_v28 = vpop.f32.mrb[21].mxu1  ;;  %3078 = vmatprep.mubr.f32.mxu0 %v1400_v27  ;;  %v1339_v29 = vmul.f32 0.2, %v2955_v26  ;;  %vm1275_vm2 = vcmp.ge.f32.partialorder %v2955_v26, 0.0 }
 0x370   : > { %vm1274_vm1 = vcmp.ge.f32.partialorder %v1147_v28, 0.0  ;;  %v1338_v30 = vmul.f32 0.2, %v1147_v28  ;;  %3079 = vmatmul.mubr.f32.gmra.mrb[82].mxu0 %v1401_v31  ;;  %3282 = vmatprep.subr.bf16.mxu1 %v3281_v23 }
 0x371   : > { %v1403_v37 = vsel %vm1275_vm2, %v2955_v26, %v1339_v29  ;;  %v1954_v26 = vld [vmem:[#allocation2 + $0x38] sm:$0xff]  ;;  %v1955_v29 = vld [vmem:[#allocation2 + $0x40] sm:$0xff] }
 0x372   : > { %v2958_v32 = vpop.f32.mrb[22].mxu1  ;;  %v1402_v33 = vsel %vm1274_vm1, %v1147_v28, %v1338_v30  ;;  %3284 = vmatpush3.bf16.msra.mxu1 %v3281_v23  ;;  %v3285_v27 = vpack.c.bf16 %v1954_v26, %v1953_v25  ;;  %v1956_v30 = vld [vmem:[#allocation2 + $0x48] sm:$0xff] }
 0x373   : > { %vm1277_vm3 = vcmp.ge.f32.partialorder %v2958_v32, 0.0  ;;  %v1341_v34 = vmul.f32 0.2, %v2958_v32  ;;  %v1157_v35 = vpop.f32.mrb[23].mxu1  ;;  %3081 = vmatprep.mubr.f32.mxu0 %v1402_v33  ;;  %v1957_v33 = vld [vmem:[#allocation2 + $0x50] sm:$0xff] }
 0x374   : > { %vm1276_vm4 = vcmp.ge.f32.partialorder %v1157_v35, 0.0  ;;  %v1340_v36 = vmul.f32 0.2, %v1157_v35  ;;  %3082 = vmatmul.mubr.f32.gmra.mrb[84].mxu0 %v1403_v37  ;;  %3286 = vmatprep.subr.bf16.mxu1 %v3285_v27  ;;  %v1959_v37 = vld [vmem:[#allocation2 + $0x60] sm:$0xff] }
 0x375   : > { %v1405_v39 = vsel %vm1277_vm3, %v2958_v32, %v1341_v34  ;;  %v3289_v32 = vpack.c.bf16 %v1956_v30, %v1955_v29  ;;  %v1958_v34 = vld [vmem:[#allocation2 + $0x58] sm:$0xff] }
 0x376   : > { %v1404_v38 = vsel %vm1276_vm4, %v1157_v35, %v1340_v36  ;;  %v2961_v40 = vpop.f32.mrb[24].mxu1  ;;  %3288 = vmatpush3.bf16.msra.mxu1 %v3285_v27  ;;  %v3293_v35 = vpack.c.bf16 %v1958_v34, %v1957_v33 }
 0x377   : > { %3084 = vmatprep.mubr.f32.mxu0 %v1404_v38  ;;  %vm1279_vm5 = vcmp.ge.f32.partialorder %v2961_v40, 0.0  ;;  %v1343_v41 = vmul.f32 0.2, %v2961_v40  ;;  %v1167_v42 = vpop.f32.mrb[25].mxu1  ;;  %3290 = vmatprep.subr.bf16.mxu1 %v3289_v32  ;;  %v1960_v38 = vld [vmem:[#allocation2 + $0x68] sm:$0xff] }
 0x378   : > { %vm1278_vm6 = vcmp.ge.f32.partialorder %v1167_v42, 0.0  ;;  %v1342_v43 = vmul.f32 0.2, %v1167_v42  ;;  %3085 = vmatmul.mubr.f32.gmra.mrb[86].mxu0 %v1405_v39 }
 0x379   : > { %v1407_v45 = vsel %vm1279_vm5, %v2961_v40, %v1343_v41  ;;  %v3297_v40 = vpack.c.bf16 %v1960_v38, %v1959_v37  ;;  %v1961_v41 = vld [vmem:[#allocation2 + $0x70] sm:$0xff] }
 0x37a   : > { %v1406_v44 = vsel %vm1278_vm6, %v1167_v42, %v1342_v43  ;;  %v2964_v46 = vpop.f32.mrb[26].mxu1  ;;  %3292 = vmatpush3.bf16.msra.mxu1 %v3289_v32  ;;  %v1962_v42 = vld [vmem:[#allocation2 + $0x78] sm:$0xff] }
 0x37b   : > { %3087 = vmatprep.mubr.f32.mxu0 %v1406_v44  ;;  %vm1281_vm7 = vcmp.ge.f32.partialorder %v2964_v46, 0.0  ;;  %v1345_v47 = vmul.f32 0.2, %v2964_v46  ;;  %v1177_v48 = vpop.f32.mrb[27].mxu1  ;;  %3294 = vmatprep.subr.bf16.mxu1 %v3293_v35  ;;  %v3301_v43 = vpack.c.bf16 %v1962_v42, %v1961_v41 }
 0x37c   : > { %vm1280_vm8 = vcmp.ge.f32.partialorder %v1177_v48, 0.0  ;;  %v1344_v49 = vmul.f32 0.2, %v1177_v48  ;;  %3088 = vmatmul.mubr.f32.gmra.mrb[88].mxu0 %v1407_v45 }
 0x37d   : > { %v1409_v51 = vsel %vm1281_vm7, %v2964_v46, %v1345_v47 }
 0x37e   : > { %v1408_v50 = vsel %vm1280_vm8, %v1177_v48, %v1344_v49  ;;  %v2967_v52 = vpop.f32.mrb[28].mxu1  ;;  %3296 = vmatpush3.bf16.msra.mxu1 %v3293_v35 }
 0x37f   : > { %3090 = vmatprep.mubr.f32.mxu0 %v1408_v50  ;;  %vm1283_vm9 = vcmp.ge.f32.partialorder %v2967_v52, 0.0  ;;  %v1347_v54 = vmul.f32 0.2, %v2967_v52  ;;  %v1187_v55 = vpop.f32.mrb[29].mxu1  ;;  %3298 = vmatprep.subr.bf16.mxu1 %v3297_v40 }
 0x380   : > { %vm1282_vm10 = vcmp.ge.f32.partialorder %v1187_v55, 0.0  ;;  %v1346_v56 = vmul.f32 0.2, %v1187_v55  ;;  %3091 = vmatmul.mubr.f32.gmra.mrb[90].mxu0 %v1409_v51 }
 0x381   : > { %v1411_v57 = vsel %vm1283_vm9, %v2967_v52, %v1347_v54 }
 0x382   : > { %v1410_v53 = vsel %vm1282_vm10, %v1187_v55, %v1346_v56  ;;  %v2970_v58 = vpop.f32.mrb[30].mxu1  ;;  %3300 = vmatpush3.bf16.msra.mxu1 %v3297_v40 }
 0x383   : > { %3093 = vmatprep.mubr.f32.mxu0 %v1410_v53  ;;  %vm1285_vm11 = vcmp.ge.f32.partialorder %v2970_v58, 0.0  ;;  %v1349_v59 = vmul.f32 0.2, %v2970_v58  ;;  %v1197_v60 = vpop.f32.mrb[31].mxu1  ;;  %3302 = vmatprep.subr.bf16.mxu1 %v3301_v43 }
 0x384   : > { %vm1284_vm12 = vcmp.ge.f32.partialorder %v1197_v60, 0.0  ;;  %v1348_v61 = vmul.f32 0.2, %v1197_v60  ;;  %3094 = vmatmul.mubr.f32.gmra.mrb[92].mxu0 %v1411_v57 }
 0x385   : > { %v1413_v63 = vsel %vm1285_vm11, %v2970_v58, %v1349_v59 }
 0x386   : > { %v1412_v62 = vsel %vm1284_vm12, %v1197_v60, %v1348_v61  ;;  %v2973_v0 = vpop.f32.mrb[32].mxu1  ;;  %3304 = vmatpush3.bf16.msra.mxu1 %v3301_v43 }
 0x387   : > { %3096 = vmatprep.mubr.f32.mxu0 %v1412_v62  ;;  %vm1287_vm13 = vcmp.ge.f32.partialorder %v2973_v0, 0.0  ;;  %v1351_v1 = vmul.f32 0.2, %v2973_v0  ;;  %v1207_v2 = vpop.f32.mrb[33].mxu1 }
 0x388   : > { %vm1286_vm14 = vcmp.ge.f32.partialorder %v1207_v2, 0.0  ;;  %v1350_v3 = vmul.f32 0.2, %v1207_v2  ;;  %3097 = vmatmul.mubr.f32.gmra.mrb[94].mxu0 %v1413_v63 }
 0x389   : > { %v1415_v5 = vsel %vm1287_vm13, %v2973_v0, %v1351_v1 }
 0x38a   : > { %v1414_v4 = vsel %vm1286_vm14, %v1207_v2, %v1350_v3  ;;  %v2976_v6 = vpop.f32.mrb[34].mxu1 }
 0x38b   : > { %3099 = vmatprep.mubr.f32.mxu0 %v1414_v4  ;;  %vm1289_vm15 = vcmp.ge.f32.partialorder %v2976_v6, 0.0  ;;  %v1353_v7 = vmul.f32 0.2, %v2976_v6  ;;  %v1217_v8 = vpop.f32.mrb[35].mxu1 }
 0x38c   : > { %vm1288_vm0 = vcmp.ge.f32.partialorder %v1217_v8, 0.0  ;;  %v1352_v9 = vmul.f32 0.2, %v1217_v8  ;;  %3100 = vmatmul.mubr.f32.gmra.mrb[96].mxu0 %v1415_v5 }
 0x38d   : > { %v1417_v11 = vsel %vm1289_vm15, %v2976_v6, %v1353_v7 }
 0x38e   : > { %v1416_v10 = vsel %vm1288_vm0, %v1217_v8, %v1352_v9 }
 0x38f   : > { %3102 = vmatprep.mubr.f32.mxu0 %v1416_v10 }
 0x390   : > { %3103 = vmatmul.mubr.f32.gmra.mrb[98].mxu0 %v1417_v11 }
 0x3cb   : > { %v3011_v17 = vpop.f32.mrb[36].mxu0 }
 0x3cc   : > { %v1500_v19 = vpop.f32.mrb[37].mxu0 }
 0x3cd   : > { %1819 = vxpose.xlu0.b32.start [1/16] %v1500_v19, 128 }
 0x3d1   : > { %1820 = vxpose.xlu0.b32.cont [2/16] %v3011_v17, 128 }
 0x3d3   : > { %v3014_v22 = vpop.f32.mrb[38].mxu0 }
 0x3d4   : > { %v1510_v24 = vpop.f32.mrb[39].mxu0 }
 0x3d5   : > { %1821 = vxpose.xlu0.b32.cont [3/16] %v1510_v24, 128 }
 0x3d9   : > { %1822 = vxpose.xlu0.b32.cont [4/16] %v3014_v22, 128 }
 0x3db   : > { %v3017_v28 = vpop.f32.mrb[40].mxu0 }
 0x3dc   : > { %v1520_v31 = vpop.f32.mrb[41].mxu0 }
 0x3dd   : > { %1823 = vxpose.xlu0.b32.cont [5/16] %v1520_v31, 128 }
 0x3e1   : > { %1824 = vxpose.xlu0.b32.cont [6/16] %v3017_v28, 128 }
 0x3e3   : > { %v3020_v36 = vpop.f32.mrb[42].mxu0 }
 0x3e4   : > { %v1530_v39 = vpop.f32.mrb[43].mxu0 }
 0x3e5   : > { %1825 = vxpose.xlu0.b32.cont [7/16] %v1530_v39, 128 }
 0x3e9   : > { %1826 = vxpose.xlu0.b32.cont [8/16] %v3020_v36, 128 }
 0x3eb   : > { %v3023_v44 = vpop.f32.mrb[44].mxu0 }
 0x3ec   : > { %v1540_v45 = vpop.f32.mrb[45].mxu0 }
 0x3ed   : > { %1827 = vxpose.xlu0.b32.cont [9/16] %v1540_v45, 128 }
 0x3f1   : > { %1828 = vxpose.xlu0.b32.cont [10/16] %v3023_v44, 128 }
 0x3f3   : > { %v3026_v46 = vpop.f32.mrb[46].mxu0 }
 0x3f4   : > { %v1550_v47 = vpop.f32.mrb[47].mxu0 }
 0x3f5   : > { %1829 = vxpose.xlu0.b32.cont [11/16] %v1550_v47, 128 }
 0x3f9   : > { %1830 = vxpose.xlu0.b32.cont [12/16] %v3026_v46, 128 }
 0x3fb   : > { %v3029_v48 = vpop.f32.mrb[48].mxu0 }
 0x3fc   : > { %v1560_v49 = vpop.f32.mrb[49].mxu0 }
 0x3fd   : > { %1831 = vxpose.xlu0.b32.cont [13/16] %v1560_v49, 128 }
 0x401   : > { %1832 = vxpose.xlu0.b32.cont [14/16] %v3029_v48, 128 }
 0x403   : > { %v3032_v50 = vpop.f32.mrb[50].mxu0 }
 0x404   : > { %v1570_v51 = vpop.f32.mrb[51].mxu0 }
 0x405   : > { %1833 = vxpose.xlu0.b32.cont [15/16] %v1570_v51, 128 }
 0x407   : > { %v3035_v52 = vpop.f32.mrb[52].mxu0 }
 0x408   : > { %v1580_v54 = vpop.f32.mrb[53].mxu0 }
 0x409   : > { %1834 = vxpose.xlu0.b32.end [16/16] %v3032_v50, 128  ;;  %1851 = vxpose.xlu1.b32.start [1/16] %v1580_v54, 128 }
 0x40b   : > { %v3038_v55 = vpop.f32.mrb[54].mxu0 }
 0x40c   : > { %v1590_v56 = vpop.f32.mrb[55].mxu0 }
 0x40d   : > { %1852 = vxpose.xlu1.b32.cont [2/16] %v3035_v52, 128 }
 0x40f   : > { %v3041_v53 = vpop.f32.mrb[56].mxu0 }
 0x410   : > { %v1600_v57 = vpop.f32.mrb[57].mxu0 }
 0x411   : > { %1853 = vxpose.xlu1.b32.cont [3/16] %v1590_v56, 128 }
 0x413   : > { %v3044_v58 = vpop.f32.mrb[58].mxu0 }
 0x414   : > { %v1610_v59 = vpop.f32.mrb[59].mxu0 }
 0x415   : > { %1854 = vxpose.xlu1.b32.cont [4/16] %v3038_v55, 128 }
 0x417   : > { %v3047_v60 = vpop.f32.mrb[60].mxu0 }
 0x418   : > { %v1620_v61 = vpop.f32.mrb[61].mxu0 }
 0x419   : > { %1855 = vxpose.xlu1.b32.cont [5/16] %v1600_v57, 128 }
 0x41b   : > { %v3050_v62 = vpop.f32.mrb[62].mxu0 }
 0x41c   : > { %v1630_v63 = vpop.f32.mrb[63].mxu0 }
 0x41d   : > { %1856 = vxpose.xlu1.b32.cont [6/16] %v3041_v53, 128 }
 0x41f   : > { %v3053_v0 = vpop.f32.mrb[64].mxu0 }
 0x420   : > { %v1640_v1 = vpop.f32.mrb[65].mxu0 }
 0x421   : > { %1857 = vxpose.xlu1.b32.cont [7/16] %v1610_v59, 128 }
 0x423   : > { %v3056_v2 = vpop.f32.mrb[66].mxu0 }
 0x424   : > { %v1650_v3 = vpop.f32.mrb[67].mxu0 }
 0x425   : > { %1858 = vxpose.xlu1.b32.cont [8/16] %v3044_v58, 128 }
 0x427   : > { %v3059_v4 = vpop.f32.mrb[68].mxu0 }
 0x428   : > { %v1660_v5 = vpop.f32.mrb[69].mxu0 }
 0x429   : > { %1859 = vxpose.xlu1.b32.cont [9/16] %v1620_v61, 128  ;;  %1883 = vxpose.xlu0.b32.start [1/16] %v1660_v5, 128 }
 0x42b   : > { %v3062_v6 = vpop.f32.mrb[70].mxu0 }
 0x42c   : > { %v1670_v7 = vpop.f32.mrb[71].mxu0 }
 0x42d   : > { %1860 = vxpose.xlu1.b32.cont [10/16] %v3047_v60, 128  ;;  %1884 = vxpose.xlu0.b32.cont [2/16] %v3059_v4, 128 }
 0x42f   : > { %v3065_v8 = vpop.f32.mrb[72].mxu0 }
 0x430   : > { %v1680_v9 = vpop.f32.mrb[73].mxu0 }
 0x431   : > { %1861 = vxpose.xlu1.b32.cont [11/16] %v1630_v63, 128  ;;  %1885 = vxpose.xlu0.b32.cont [3/16] %v1670_v7, 128 }
 0x433   : > { %v3068_v10 = vpop.f32.mrb[74].mxu0 }
 0x434   : > { %v1690_v11 = vpop.f32.mrb[75].mxu0 }
 0x435   : > { %1862 = vxpose.xlu1.b32.cont [12/16] %v3050_v62, 128  ;;  %1886 = vxpose.xlu0.b32.cont [4/16] %v3062_v6, 128 }
 0x437   : > { %v3071_v12 = vpop.f32.mrb[76].mxu0 }
 0x438   : > { %v1700_v13 = vpop.f32.mrb[77].mxu0 }
 0x439   : > { %1863 = vxpose.xlu1.b32.cont [13/16] %v1640_v1, 128  ;;  %1887 = vxpose.xlu0.b32.cont [5/16] %v1680_v9, 128 }
 0x43b   : > { %v3074_v14 = vpop.f32.mrb[78].mxu0 }
 0x43c   : > { %v1710_v15 = vpop.f32.mrb[79].mxu0 }
 0x43d   : > { %1864 = vxpose.xlu1.b32.cont [14/16] %v3053_v0, 128  ;;  %1888 = vxpose.xlu0.b32.cont [6/16] %v3065_v8, 128 }
 0x43f   : > { %v3077_v16 = vpop.f32.mrb[80].mxu0 }
 0x440   : > { %v1720_v17 = vpop.f32.mrb[81].mxu0 }
 0x441   : > { %1865 = vxpose.xlu1.b32.cont [15/16] %v1650_v3, 128  ;;  %1889 = vxpose.xlu0.b32.cont [7/16] %v1690_v11, 128 }
 0x443   : > { %v3080_v18 = vpop.f32.mrb[82].mxu0 }
 0x444   : > { %v1730_v19 = vpop.f32.mrb[83].mxu0 }
 0x445   : > { %1866 = vxpose.xlu1.b32.end [16/16] %v3056_v2, 128  ;;  %1890 = vxpose.xlu0.b32.cont [8/16] %v3068_v10, 128 }
 0x447   : > { %v3083_v20 = vpop.f32.mrb[84].mxu0 }
 0x448   : > { %v1740_v21 = vpop.f32.mrb[85].mxu0 }
 0x449   : > { %1891 = vxpose.xlu0.b32.cont [9/16] %v1700_v13, 128  ;;  %1915 = vxpose.xlu1.b32.start [1/16] %v1740_v21, 128 }
 0x44b   : > { %v3086_v22 = vpop.f32.mrb[86].mxu0 }
 0x44c   : > { %v1750_v23 = vpop.f32.mrb[87].mxu0 }
 0x44d   : > { %v1835_v24 = vpop.trf.xlu0  ;;  %1892 = vxpose.xlu0.b32.cont [10/16] %v3071_v12, 128  ;;  %1916 = vxpose.xlu1.b32.cont [2/16] %v3083_v20, 128 }
 0x44e   : > { %3137 = vmatprep.mubr.f32.mxu1 %v1835_v24 }
 0x44f   : > { %v3089_v25 = vpop.f32.mrb[88].mxu0 }
 0x450   : > { %v1760_v27 = vpop.f32.mrb[89].mxu0 }
 0x451   : > { %v1836_v26 = vpop.trf.xlu0  ;;  %1893 = vxpose.xlu0.b32.cont [11/16] %v1710_v15, 128  ;;  %1917 = vxpose.xlu1.b32.cont [3/16] %v1750_v23, 128 }
 0x452   : > { %3138 = vmatmul.mubr.f32.vlgmr.msra.gmra.mrb[36].mxu1 %v1836_v26 }
 0x453   : > { %v3092_v28 = vpop.f32.mrb[90].mxu0 }
 0x454   : > { %v1770_v30 = vpop.f32.mrb[91].mxu0 }
 0x455   : > { %v1837_v29 = vpop.trf.xlu0  ;;  %1894 = vxpose.xlu0.b32.cont [12/16] %v3074_v14, 128  ;;  %1918 = vxpose.xlu1.b32.cont [4/16] %v3086_v22, 128 }
 0x456   : > { %3140 = vmatprep.mubr.f32.mxu1 %v1837_v29 }
 0x457   : > { %v3095_v31 = vpop.f32.mrb[92].mxu0 }
 0x458   : > { %v1780_v33 = vpop.f32.mrb[93].mxu0 }
 0x459   : > { %v1838_v32 = vpop.trf.xlu0  ;;  %1895 = vxpose.xlu0.b32.cont [13/16] %v1720_v17, 128  ;;  %1919 = vxpose.xlu1.b32.cont [5/16] %v1760_v27, 128 }
 0x45a   : > { %3141 = vmatmul.mubr.f32.gmra.mrb[38].mxu1 %v1838_v32 }
 0x45b   : > { %v3098_v34 = vpop.f32.mrb[94].mxu0 }
 0x45c   : > { %v1790_v36 = vpop.f32.mrb[95].mxu0 }
 0x45d   : > { %v1839_v35 = vpop.trf.xlu0  ;;  %1896 = vxpose.xlu0.b32.cont [14/16] %v3077_v16, 128  ;;  %1920 = vxpose.xlu1.b32.cont [6/16] %v3089_v25, 128 }
 0x45e   : > { %3143 = vmatprep.mubr.f32.mxu1 %v1839_v35 }
 0x45f   : > { %v3101_v37 = vpop.f32.mrb[96].mxu0 }
 0x460   : > { %v1800_v39 = vpop.f32.mrb[97].mxu0 }
 0x461   : > { %v1840_v38 = vpop.trf.xlu0  ;;  %1897 = vxpose.xlu0.b32.cont [15/16] %v1730_v19, 128  ;;  %1921 = vxpose.xlu1.b32.cont [7/16] %v1770_v30, 128 }
 0x462   : > { %3144 = vmatmul.mubr.f32.gmra.mrb[40].mxu1 %v1840_v38 }
 0x463   : > { %v3104_v40 = vpop.f32.mrb[98].mxu0 }
 0x464   : > { %v1810_v42 = vpop.f32.mrb[99].mxu0 }
 0x465   : > { %v1841_v41 = vpop.trf.xlu0  ;;  %1898 = vxpose.xlu0.b32.end [16/16] %v3080_v18, 128  ;;  %1922 = vxpose.xlu1.b32.cont [8/16] %v3092_v28, 128 }
 0x466   : > { %3146 = vmatprep.mubr.f32.mxu1 %v1841_v41 }
 0x469   : > { %v1842_v43 = vpop.trf.xlu0  ;;  %1923 = vxpose.xlu1.b32.cont [9/16] %v1780_v33, 128 }
 0x46a   : > { %3147 = vmatmul.mubr.f32.gmra.mrb[42].mxu1 %v1842_v43 }
 0x46d   : > { %v1843_v44 = vpop.trf.xlu0  ;;  %1924 = vxpose.xlu1.b32.cont [10/16] %v3095_v31, 128 }
 0x46e   : > { %3149 = vmatprep.mubr.f32.mxu1 %v1843_v44 }
 0x471   : > { %v1844_v45 = vpop.trf.xlu0  ;;  %1925 = vxpose.xlu1.b32.cont [11/16] %v1790_v36, 128 }
 0x472   : > { %3150 = vmatmul.mubr.f32.gmra.mrb[44].mxu1 %v1844_v45 }
 0x475   : > { %v1845_v46 = vpop.trf.xlu0  ;;  %1926 = vxpose.xlu1.b32.cont [12/16] %v3098_v34, 128 }
 0x476   : > { %3152 = vmatprep.mubr.f32.mxu1 %v1845_v46 }
 0x479   : > { %v1846_v47 = vpop.trf.xlu0  ;;  %1927 = vxpose.xlu1.b32.cont [13/16] %v1800_v39, 128 }
 0x47a   : > { %3153 = vmatmul.mubr.f32.gmra.mrb[46].mxu1 %v1846_v47 }
 0x47d   : > { %v1847_v48 = vpop.trf.xlu0  ;;  %1928 = vxpose.xlu1.b32.cont [14/16] %v3101_v37, 128 }
 0x47e   : > { %3155 = vmatprep.mubr.f32.mxu1 %v1847_v48 }
 0x481   : > { %v1848_v49 = vpop.trf.xlu0  ;;  %1929 = vxpose.xlu1.b32.cont [15/16] %v1810_v42, 128 }
 0x482   : > { %3156 = vmatmul.mubr.f32.gmra.mrb[48].mxu1 %v1848_v49 }
 0x485   : > { %v1849_v50 = vpop.trf.xlu0  ;;  %1930 = vxpose.xlu1.b32.end [16/16] %v3104_v40, 128 }
 0x486   : > { %3158 = vmatprep.mubr.f32.mxu1 %v1849_v50 }
 0x489   : > { %v1850_v51 = vpop.trf.xlu0  ;;  %v1867_v52 = vpop.trf.xlu1 }
 0x48a   : > { %3159 = vmatmul.mubr.f32.gmra.mrb[50].mxu1 %v1850_v51 }
 0x48b   : > { %3161 = vmatprep.mubr.f32.mxu1 %v1867_v52 }
 0x48d   : > { %v1868_v54 = vpop.trf.xlu1 }
 0x48e   : > { %3162 = vmatmul.mubr.f32.gmra.mrb[52].mxu1 %v1868_v54 }
 0x491   : > { %v1869_v55 = vpop.trf.xlu1 }
 0x492   : > { %3164 = vmatprep.mubr.f32.mxu1 %v1869_v55 }
 0x495   : > { %v1870_v56 = vpop.trf.xlu1 }
 0x496   : > { %3165 = vmatmul.mubr.f32.gmra.mrb[54].mxu1 %v1870_v56 }
 0x499   : > { %v1871_v53 = vpop.trf.xlu1 }
 0x49a   : > { %3167 = vmatprep.mubr.f32.mxu1 %v1871_v53 }
 0x49d   : > { %v1872_v57 = vpop.trf.xlu1 }
 0x49e   : > { %3168 = vmatmul.mubr.f32.gmra.mrb[56].mxu1 %v1872_v57 }
 0x4a1   : > { %v1873_v58 = vpop.trf.xlu1 }
 0x4a2   : > { %3170 = vmatprep.mubr.f32.mxu1 %v1873_v58 }
 0x4a5   : > { %v1874_v59 = vpop.trf.xlu1 }
 0x4a6   : > { %3171 = vmatmul.mubr.f32.gmra.mrb[58].mxu1 %v1874_v59 }
 0x4a9   : > { %v1875_v60 = vpop.trf.xlu1  ;;  %v1899_v61 = vpop.trf.xlu0 }
 0x4aa   : > { %3173 = vmatprep.mubr.f32.mxu1 %v1875_v60 }
 0x4ad   : > { %v1876_v62 = vpop.trf.xlu1  ;;  %v1900_v63 = vpop.trf.xlu0 }
 0x4ae   : > { %3174 = vmatmul.mubr.f32.gmra.mrb[60].mxu1 %v1876_v62 }
 0x4b1   : > { %v1877_v0 = vpop.trf.xlu1  ;;  %v1901_v1 = vpop.trf.xlu0 }
 0x4b2   : > { %3176 = vmatprep.mubr.f32.mxu1 %v1877_v0 }
 0x4b5   : > { %v1878_v2 = vpop.trf.xlu1  ;;  %v1902_v3 = vpop.trf.xlu0 }
 0x4b6   : > { %3177 = vmatmul.mubr.f32.gmra.mrb[62].mxu1 %v1878_v2 }
 0x4b9   : > { %v1879_v4 = vpop.trf.xlu1  ;;  %v1903_v5 = vpop.trf.xlu0 }
 0x4ba   : > { %3179 = vmatprep.mubr.f32.mxu1 %v1879_v4 }
 0x4bd   : > { %v1880_v6 = vpop.trf.xlu1  ;;  %v1904_v7 = vpop.trf.xlu0 }
 0x4be   : > { %3180 = vmatmul.mubr.f32.gmra.mrb[64].mxu1 %v1880_v6 }
 0x4c1   : > { %v1881_v8 = vpop.trf.xlu1  ;;  %v1905_v9 = vpop.trf.xlu0 }
 0x4c2   : > { %3182 = vmatprep.mubr.f32.mxu1 %v1881_v8 }
 0x4c5   : > { %v1882_v10 = vpop.trf.xlu1  ;;  %v1906_v11 = vpop.trf.xlu0 }
 0x4c6   : > { %3183 = vmatmul.mubr.f32.gmra.mrb[66].mxu1 %v1882_v10 }
 0x4c7   : > { %3185 = vmatprep.mubr.f32.mxu1 %v1899_v61 }
 0x4c9   : > { %v1907_v12 = vpop.trf.xlu0  ;;  %v1931_v13 = vpop.trf.xlu1 }
 0x4ca   : > { %3186 = vmatmul.mubr.f32.gmra.mrb[68].mxu1 %v1900_v63 }
 0x4cb   : > { %3188 = vmatprep.mubr.f32.mxu1 %v1901_v1 }
 0x4cd   : > { %v1908_v14 = vpop.trf.xlu0  ;;  %v1932_v15 = vpop.trf.xlu1 }
 0x4ce   : > { %3189 = vmatmul.mubr.f32.gmra.mrb[70].mxu1 %v1902_v3 }
 0x4cf   : > { %3191 = vmatprep.mubr.f32.mxu1 %v1903_v5 }
 0x4d1   : > { %v1909_v16 = vpop.trf.xlu0  ;;  %v1933_v17 = vpop.trf.xlu1 }
 0x4d2   : > { %3192 = vmatmul.mubr.f32.gmra.mrb[72].mxu1 %v1904_v7 }
 0x4d3   : > { %3194 = vmatprep.mubr.f32.mxu1 %v1905_v9 }
 0x4d5   : > { %v1910_v18 = vpop.trf.xlu0  ;;  %v1934_v19 = vpop.trf.xlu1 }
 0x4d6   : > { %3195 = vmatmul.mubr.f32.gmra.mrb[74].mxu1 %v1906_v11 }
 0x4d7   : > { %3197 = vmatprep.mubr.f32.mxu1 %v1907_v12 }
 0x4d9   : > { %v1911_v20 = vpop.trf.xlu0  ;;  %v1935_v21 = vpop.trf.xlu1 }
 0x4da   : > { %3198 = vmatmul.mubr.f32.gmra.mrb[76].mxu1 %v1908_v14 }
 0x4db   : > { %3200 = vmatprep.mubr.f32.mxu1 %v1909_v16 }
 0x4dd   : > { %v1912_v22 = vpop.trf.xlu0  ;;  %v1936_v23 = vpop.trf.xlu1 }
 0x4de   : > { %3201 = vmatmul.mubr.f32.gmra.mrb[78].mxu1 %v1910_v18 }
 0x4df   : > { %3203 = vmatprep.mubr.f32.mxu1 %v1911_v20 }
 0x4e1   : > { %v1913_v24 = vpop.trf.xlu0  ;;  %v1937_v25 = vpop.trf.xlu1 }
 0x4e2   : > { %3204 = vmatmul.mubr.f32.gmra.mrb[80].mxu1 %v1912_v22 }
 0x4e3   : > { %3206 = vmatprep.mubr.f32.mxu1 %v1913_v24 }
 0x4e5   : > { %v1914_v26 = vpop.trf.xlu0  ;;  %v1938_v27 = vpop.trf.xlu1 }
 0x4e6   : > { %3207 = vmatmul.mubr.f32.gmra.mrb[82].mxu1 %v1914_v26 }
 0x4e7   : > { %3209 = vmatprep.mubr.f32.mxu1 %v1931_v13 }
 0x4e9   : > { %v1939_v28 = vpop.trf.xlu1 }
 0x4ea   : > { %3210 = vmatmul.mubr.f32.gmra.mrb[84].mxu1 %v1932_v15 }
 0x4eb   : > { %3212 = vmatprep.mubr.f32.mxu1 %v1933_v17 }
 0x4ed   : > { %v1940_v29 = vpop.trf.xlu1 }
 0x4ee   : > { %3213 = vmatmul.mubr.f32.gmra.mrb[86].mxu1 %v1934_v19 }
 0x4ef   : > { %3215 = vmatprep.mubr.f32.mxu1 %v1935_v21 }
 0x4f1   : > { %v1941_v30 = vpop.trf.xlu1 }
 0x4f2   : > { %3216 = vmatmul.mubr.f32.gmra.mrb[88].mxu1 %v1936_v23 }
 0x4f3   : > { %3218 = vmatprep.mubr.f32.mxu1 %v1937_v25 }
 0x4f5   : > { %v1942_v31 = vpop.trf.xlu1 }
 0x4f6   : > { %3219 = vmatmul.mubr.f32.gmra.mrb[90].mxu1 %v1938_v27 }
 0x4f7   : > { %3221 = vmatprep.mubr.f32.mxu1 %v1939_v28 }
 0x4f9   : > { %v1943_v32 = vpop.trf.xlu1 }
 0x4fa   : > { %3222 = vmatmul.mubr.f32.gmra.mrb[92].mxu1 %v1940_v29 }
 0x4fb   : > { %3224 = vmatprep.mubr.f32.mxu1 %v1941_v30 }
 0x4fd   : > { %v1944_v33 = vpop.trf.xlu1 }
 0x4fe   : > { %3225 = vmatmul.mubr.f32.gmra.mrb[94].mxu1 %v1942_v31 }
 0x4ff   : > { %3227 = vmatprep.mubr.f32.mxu1 %v1943_v32 }
 0x501   : > { %v1945_v34 = vpop.trf.xlu1 }
 0x502   : > { %3228 = vmatmul.mubr.f32.gmra.mrb[96].mxu1 %v1944_v33 }
 0x503   : > { %3230 = vmatprep.mubr.f32.mxu1 %v1945_v34 }
 0x505   : > { %v1946_v35 = vpop.trf.xlu1 }
 0x506   : > { %3231 = vmatmul.mubr.f32.gmra.mrb[98].mxu1 %v1946_v35 }
 0x525   : > { %v3139_v36 = vpop.f32.mrb[36].mxu1 }
 0x526   : > { %2349 = vst [vmem:[%s3845_s27 + $0x8] sm:$0xff] %v3139_v36  ;;  %v2029_v37 = vpop.f32.mrb[37].mxu1 }
 0x527   : > { %2348 = vst [vmem:[%s3845_s27] sm:$0xff] %v2029_v37 }
 0x52d   : > { %v3142_v38 = vpop.f32.mrb[38].mxu1 }
 0x52e   : > { %2351 = vst [vmem:[%s3845_s27 + $0x18] sm:$0xff] %v3142_v38  ;;  %v2039_v39 = vpop.f32.mrb[39].mxu1 }
 0x52f   : > { %2350 = vst [vmem:[%s3845_s27 + $0x10] sm:$0xff] %v2039_v39 }
 0x535   : > { %v3145_v40 = vpop.f32.mrb[40].mxu1 }
 0x536   : > { %2353 = vst [vmem:[%s3845_s27 + $0x28] sm:$0xff] %v3145_v40  ;;  %v2049_v41 = vpop.f32.mrb[41].mxu1 }
 0x537   : > { %2352 = vst [vmem:[%s3845_s27 + $0x20] sm:$0xff] %v2049_v41 }
 0x53d   : > { %v3148_v42 = vpop.f32.mrb[42].mxu1 }
 0x53e   : > { %2355 = vst [vmem:[%s3845_s27 + $0x38] sm:$0xff] %v3148_v42  ;;  %v2059_v43 = vpop.f32.mrb[43].mxu1 }
 0x53f   : > { %2354 = vst [vmem:[%s3845_s27 + $0x30] sm:$0xff] %v2059_v43 }
 0x545   : > { %v3151_v44 = vpop.f32.mrb[44].mxu1 }
 0x546   : > { %2357 = vst [vmem:[%s3845_s27 + $0x48] sm:$0xff] %v3151_v44  ;;  %v2069_v45 = vpop.f32.mrb[45].mxu1 }
 0x547   : > { %2356 = vst [vmem:[%s3845_s27 + $0x40] sm:$0xff] %v2069_v45 }
 0x54d   : > { %v3154_v46 = vpop.f32.mrb[46].mxu1 }
 0x54e   : > { %2359 = vst [vmem:[%s3845_s27 + $0x58] sm:$0xff] %v3154_v46  ;;  %v2079_v47 = vpop.f32.mrb[47].mxu1 }
 0x54f   : > { %2358 = vst [vmem:[%s3845_s27 + $0x50] sm:$0xff] %v2079_v47 }
 0x555   : > { %v3157_v48 = vpop.f32.mrb[48].mxu1 }
 0x556   : > { %2361 = vst [vmem:[%s3845_s27 + $0x68] sm:$0xff] %v3157_v48  ;;  %v2089_v49 = vpop.f32.mrb[49].mxu1 }
 0x557   : > { %2360 = vst [vmem:[%s3845_s27 + $0x60] sm:$0xff] %v2089_v49 }
 0x55d   : > { %v3160_v50 = vpop.f32.mrb[50].mxu1 }
 0x55e   : > { %2363 = vst [vmem:[%s3845_s27 + $0x78] sm:$0xff] %v3160_v50  ;;  %v2099_v51 = vpop.f32.mrb[51].mxu1 }
 0x55f   : > { %2362 = vst [vmem:[%s3845_s27 + $0x70] sm:$0xff] %v2099_v51 }
 0x561   : > { %v3163_v52 = vpop.f32.mrb[52].mxu1 }
 0x562   : > { %2365 = vst [vmem:[%s3845_s27 + $0x88] sm:$0xff] %v3163_v52  ;;  %v2109_v54 = vpop.f32.mrb[53].mxu1 }
 0x563   : > { %2364 = vst [vmem:[%s3845_s27 + $0x80] sm:$0xff] %v2109_v54 }
 0x569   : > { %v3166_v55 = vpop.f32.mrb[54].mxu1 }
 0x56a   : > { %2367 = vst [vmem:[%s3845_s27 + $0x98] sm:$0xff] %v3166_v55  ;;  %v2119_v56 = vpop.f32.mrb[55].mxu1 }
 0x56b   : > { %2366 = vst [vmem:[%s3845_s27 + $0x90] sm:$0xff] %v2119_v56 }
 0x571   : > { %v3169_v53 = vpop.f32.mrb[56].mxu1 }
 0x572   : > { %2369 = vst [vmem:[%s3845_s27 + $0xa8] sm:$0xff] %v3169_v53  ;;  %v2129_v57 = vpop.f32.mrb[57].mxu1 }
 0x573   : > { %2368 = vst [vmem:[%s3845_s27 + $0xa0] sm:$0xff] %v2129_v57 }
 0x579   : > { %v3172_v58 = vpop.f32.mrb[58].mxu1 }
 0x57a   : > { %2371 = vst [vmem:[%s3845_s27 + $0xb8] sm:$0xff] %v3172_v58  ;;  %v2139_v59 = vpop.f32.mrb[59].mxu1 }
 0x57b   : > { %2370 = vst [vmem:[%s3845_s27 + $0xb0] sm:$0xff] %v2139_v59 }
 0x581   : > { %v3175_v60 = vpop.f32.mrb[60].mxu1 }
 0x582   : > { %2373 = vst [vmem:[%s3845_s27 + $0xc8] sm:$0xff] %v3175_v60  ;;  %v2149_v61 = vpop.f32.mrb[61].mxu1 }
 0x583   : > { %2372 = vst [vmem:[%s3845_s27 + $0xc0] sm:$0xff] %v2149_v61 }
 0x589   : > { %v3178_v62 = vpop.f32.mrb[62].mxu1 }
 0x58a   : > { %2375 = vst [vmem:[%s3845_s27 + $0xd8] sm:$0xff] %v3178_v62  ;;  %v2159_v63 = vpop.f32.mrb[63].mxu1 }
 0x58b   : > { %2374 = vst [vmem:[%s3845_s27 + $0xd0] sm:$0xff] %v2159_v63 }
 0x591   : > { %v3181_v0 = vpop.f32.mrb[64].mxu1 }
 0x592   : > { %2377 = vst [vmem:[%s3845_s27 + $0xe8] sm:$0xff] %v3181_v0  ;;  %v2169_v1 = vpop.f32.mrb[65].mxu1 }
 0x593   : > { %2376 = vst [vmem:[%s3845_s27 + $0xe0] sm:$0xff] %v2169_v1 }
 0x599   : > { %v3184_v2 = vpop.f32.mrb[66].mxu1 }
 0x59a   : > { %2379 = vst [vmem:[%s3845_s27 + $0xf8] sm:$0xff] %v3184_v2  ;;  %v2179_v3 = vpop.f32.mrb[67].mxu1 }
 0x59b   : > { %2378 = vst [vmem:[%s3845_s27 + $0xf0] sm:$0xff] %v2179_v3 }
 0x59d   : > { %v3187_v4 = vpop.f32.mrb[68].mxu1 }
 0x59e   : > { %2381 = vst [vmem:[%s3845_s27 + $0x108] sm:$0xff] %v3187_v4  ;;  %v2189_v5 = vpop.f32.mrb[69].mxu1 }
 0x59f   : > { %2380 = vst [vmem:[%s3845_s27 + $0x100] sm:$0xff] %v2189_v5 }
 0x5a1   : > { %v3190_v6 = vpop.f32.mrb[70].mxu1 }
 0x5a2   : > { %2383 = vst [vmem:[%s3845_s27 + $0x118] sm:$0xff] %v3190_v6  ;;  %v2199_v7 = vpop.f32.mrb[71].mxu1 }
 0x5a3   : > { %2382 = vst [vmem:[%s3845_s27 + $0x110] sm:$0xff] %v2199_v7 }
 0x5a5   : > { %v3193_v8 = vpop.f32.mrb[72].mxu1 }
 0x5a6   : > { %2385 = vst [vmem:[%s3845_s27 + $0x128] sm:$0xff] %v3193_v8  ;;  %v2209_v9 = vpop.f32.mrb[73].mxu1 }
 0x5a7   : > { %2384 = vst [vmem:[%s3845_s27 + $0x120] sm:$0xff] %v2209_v9 }
 0x5a9   : > { %v3196_v10 = vpop.f32.mrb[74].mxu1 }
 0x5aa   : > { %2387 = vst [vmem:[%s3845_s27 + $0x138] sm:$0xff] %v3196_v10  ;;  %v2219_v11 = vpop.f32.mrb[75].mxu1 }
 0x5ab   : > { %2386 = vst [vmem:[%s3845_s27 + $0x130] sm:$0xff] %v2219_v11 }
 0x5ad   : > { %v3199_v12 = vpop.f32.mrb[76].mxu1 }
 0x5ae   : > { %2389 = vst [vmem:[%s3845_s27 + $0x148] sm:$0xff] %v3199_v12  ;;  %v2229_v13 = vpop.f32.mrb[77].mxu1 }
 0x5af   : > { %2388 = vst [vmem:[%s3845_s27 + $0x140] sm:$0xff] %v2229_v13 }
 0x5b1   : > { %v3202_v14 = vpop.f32.mrb[78].mxu1 }
 0x5b2   : > { %2391 = vst [vmem:[%s3845_s27 + $0x158] sm:$0xff] %v3202_v14  ;;  %v2239_v15 = vpop.f32.mrb[79].mxu1 }
 0x5b3   : > { %2390 = vst [vmem:[%s3845_s27 + $0x150] sm:$0xff] %v2239_v15 }
 0x5b5   : > { %v3205_v16 = vpop.f32.mrb[80].mxu1 }
 0x5b6   : > { %2393 = vst [vmem:[%s3845_s27 + $0x168] sm:$0xff] %v3205_v16  ;;  %v2249_v17 = vpop.f32.mrb[81].mxu1 }
 0x5b7   : > { %2392 = vst [vmem:[%s3845_s27 + $0x160] sm:$0xff] %v2249_v17 }
 0x5b9   : > { %v3208_v18 = vpop.f32.mrb[82].mxu1 }
 0x5ba   : > { %2395 = vst [vmem:[%s3845_s27 + $0x178] sm:$0xff] %v3208_v18  ;;  %v2259_v19 = vpop.f32.mrb[83].mxu1 }
 0x5bb   : > { %2394 = vst [vmem:[%s3845_s27 + $0x170] sm:$0xff] %v2259_v19 }
 0x5bd   : > { %v3211_v20 = vpop.f32.mrb[84].mxu1 }
 0x5be   : > { %2397 = vst [vmem:[%s3845_s27 + $0x188] sm:$0xff] %v3211_v20  ;;  %v2269_v21 = vpop.f32.mrb[85].mxu1 }
 0x5bf   : > { %2396 = vst [vmem:[%s3845_s27 + $0x180] sm:$0xff] %v2269_v21 }
 0x5c1   : > { %v3214_v22 = vpop.f32.mrb[86].mxu1 }
 0x5c2   : > { %2399 = vst [vmem:[%s3845_s27 + $0x198] sm:$0xff] %v3214_v22  ;;  %v2279_v23 = vpop.f32.mrb[87].mxu1 }
 0x5c3   : > { %2398 = vst [vmem:[%s3845_s27 + $0x190] sm:$0xff] %v2279_v23 }
 0x5c5   : > { %v3217_v24 = vpop.f32.mrb[88].mxu1 }
 0x5c6   : > { %2401 = vst [vmem:[%s3845_s27 + $0x1a8] sm:$0xff] %v3217_v24  ;;  %v2289_v25 = vpop.f32.mrb[89].mxu1 }
 0x5c7   : > { %2400 = vst [vmem:[%s3845_s27 + $0x1a0] sm:$0xff] %v2289_v25 }
 0x5c9   : > { %v3220_v26 = vpop.f32.mrb[90].mxu1 }
 0x5ca   : > { %2403 = vst [vmem:[%s3845_s27 + $0x1b8] sm:$0xff] %v3220_v26  ;;  %v2299_v27 = vpop.f32.mrb[91].mxu1 }
 0x5cb   : > { %2402 = vst [vmem:[%s3845_s27 + $0x1b0] sm:$0xff] %v2299_v27 }
 0x5cd   : > { %v3223_v28 = vpop.f32.mrb[92].mxu1 }
 0x5ce   : > { %2405 = vst [vmem:[%s3845_s27 + $0x1c8] sm:$0xff] %v3223_v28  ;;  %v2309_v29 = vpop.f32.mrb[93].mxu1 }
 0x5cf   : > { %2404 = vst [vmem:[%s3845_s27 + $0x1c0] sm:$0xff] %v2309_v29 }
 0x5d1   : > { %v3226_v30 = vpop.f32.mrb[94].mxu1 }
 0x5d2   : > { %2407 = vst [vmem:[%s3845_s27 + $0x1d8] sm:$0xff] %v3226_v30  ;;  %v2319_v31 = vpop.f32.mrb[95].mxu1 }
 0x5d3   : > { %2406 = vst [vmem:[%s3845_s27 + $0x1d0] sm:$0xff] %v2319_v31 }
 0x5d5   : > { %v3229_v32 = vpop.f32.mrb[96].mxu1 }
 0x5d6   : > { %2409 = vst [vmem:[%s3845_s27 + $0x1e8] sm:$0xff] %v3229_v32  ;;  %v2329_v33 = vpop.f32.mrb[97].mxu1 }
 0x5d7   : > { %2408 = vst [vmem:[%s3845_s27 + $0x1e0] sm:$0xff] %v2329_v33 }
 0x5d9   : > { %v3232_v34 = vpop.f32.mrb[98].mxu1 }
 0x5da   : > { %2411 = vst [vmem:[%s3845_s27 + $0x1f8] sm:$0xff] %v3232_v34  ;;  %v2339_v35 = vpop.f32.mrb[99].mxu1 }
 0x5db   : > { %2410 = vst [vmem:[%s3845_s27 + $0x1f0] sm:$0xff] %v2339_v35 }
 0x5dc   : > { %3423 = shalt.err (!%p3420_p6)
}
 0x5dd   : > { %s3424_s18 = scalar_lea.hbm %s3914_s16, 8192  ;;  %s3428_s20 = scalar_lea.hbm %s3974_s6, 16384 }
 0x5de   : > { %p3425_p7 = scmp.ne.s32.totalorder %s3914_s16, %s3424_s18  ;;  %p3429_p0 = scmp.lt.u32.totalorder %s3914_s16, %s3974_s6 }
 0x5df   : > { %p3430_p2 = scmp.lt.u32.totalorder %s3428_s20, %s3424_s18  ;;  %p3432_p8 = scmp.lt.u32.totalorder %s3424_s18, %s3914_s16 }
 0x5e0   : > { %p3426_p9 = pnand %p3425_p7, %p3986_p10 }
 0x5e1   : > { %p3431_p4 = por %p3430_p2, %p3429_p0 }
 0x5e2   : > { %p3427_p12 = pneg %p3426_p9 }
 0x5e3   : > { %p3433_p11 = por %p3432_p8, %p3431_p4 }
 0x5e5   : > { %p3434_p13 = pnand %p3433_p11, %p3427_p12 }
 0x5e7   : > { %3437 = shalt.err (!%p3434_p13)
}
 0x5e8   : > { %s3500_s8 = smov 128   ;;  %s3501_s13 = smov 8  }
 0x5e9   : > { %3311 = dma.vmem_to_hbm [thread:$0]  (%p3986_p10), %s3916_s30, 8192, %s3914_s16, %s3922_s24, %s3500_s8, %s3500_s8, %s3501_s13  }
 0x5ea PF: > { %p3323_p1 = scmp.ge.s32.totalorder %s3492_s26, 2  ;;  %s2443_s17 = sand.u32 1, %s3472_s21  }
 0x5eb   : > { %p3987_p3 = scmp.ne.s32.totalorder %s3980_s9, 0  ;;  %s2444_s14 = scalar_lea.sflag [#allocation4], %s2443_s17 }
 0x5ed   : > { %p3318_p5 = pnand %p3323_p1, %p3987_p3 }
 0x5ef   : > { %3467 = dma.done.wait (!%p3318_p5), %s2444_s14, 8192  }
 0x5f0   : > { %3469 = vsyncadd (!%p3318_p5), %s2444_s14, 4294959104  ;;  %s20_s26 = sadd.s32 1, %s3492_s26   ;;  %s3988_s21 = smov %s3476_s22 }
 0x5f1   : > { %p17_p6 = scmp.ge.s32.totalorder %s20_s26, 4   ;;  %s3989_s22 = smov %s3480_s23 }
 0x5f2   : > { %s3990_s23 = smov %s3590_s10  ;;  %s3991_s24 = smov %s3488_s25 }
 0x5f3   : > { %s3992_s25 = smov %s3994_s29  ;;  %19 = sbr.rel (!%p17_p6) target bundleno = 5 (0x5), region = 87 }
 0x5fa   :  { %2449 = vsyncpa [#allocation3], 1 }
 0x5fb   :  { %2451 = vsyncpa [#allocation3 + $0x1], 1 }
 0x5fc   :  { %2452 = vsyncpa [#allocation4], 1 }
 0x5fd   :  { %2454 = vsyncpa [#allocation4 + $0x1], 1 }

</bundles_post_ra>
